<compile_context>
chip_gen: v6e
topology: v6e:2x2x1
jax: 0.10.0
libtpu: 0.0.40
codegen_flags: <defaults>
</compile_context>

<pallas_src>
import functools
import math

import jax
import jax.numpy as jnp
from jax.experimental import pallas as pl
from jax.experimental.pallas import tpu as pltpu


# ----------------------------- in-kernel helpers -----------------------------

def _layernorm(x, w, b, eps=1e-5):
    mu = jnp.mean(x, axis=-1, keepdims=True)
    var = jnp.mean((x - mu) ** 2, axis=-1, keepdims=True)
    return (x - mu) * jax.lax.rsqrt(var + eps) * w + b


# ----------------------------- fused kernel -----------------------------

def fused_forward_kernel(num_heads, batch_block, seq_len, ff_block,
                         x_ref, in_w_ref, in_b_ref, pe_ref,
                         wqkv_ref, bqkv_ref, wo_ref, lvec_ref,
                         w1_ref, b1_ref, w2_ref,
                         dec_w_ref, dec_b_ref,
                         out_ref, h_ref):
    # grid = (batch_tiles, num_layers); layer axis is the fast (inner) axis.
    l = pl.program_id(1)
    Bb, S = batch_block, seq_len
    N = Bb * S
    D = wo_ref.shape[0]
    H = num_heads
    Dh = D // H
    scale = 1.0 / math.sqrt(Dh)
    bf16 = jnp.bfloat16
    f32 = jnp.float32

    # ---- first layer step of each batch tile: input proj + positional enc ----
    @pl.when(l == 0)
    def _():
        # K = Din is tiny, but this runs once per batch tile in the shadow of
        # the layer-0 weight DMA, so the low MXU utilization is hidden.
        x = x_ref[...].reshape(N, x_ref.shape[-1]).astype(bf16)
        h0 = jnp.dot(x, in_w_ref[...], preferred_element_type=f32) + in_b_ref[...]
        h0 = h0.reshape(Bb, S, D) + pe_ref[...][None]
        h_ref[...] = h0.reshape(N, D)

    # ---- encoder layer l (post-norm, ReLU FFN; dropout = identity in eval) ----
    h = h_ref[...]                      # (N, D) f32, resident in VMEM scratch
    hb = h.astype(bf16)

    # fused QKV projection: ONE (N, D) @ (D, 3D) MXU matmul, f32 bias add once.
    qkv = jnp.dot(hb, wqkv_ref[...], preferred_element_type=f32) + bqkv_ref[...]

    # softmax scale folded into q once (f32), then a single bf16 cast per slice.
    q_all = (qkv[:, :D] * scale).astype(bf16)        # (N, D)
    k_all = qkv[:, D:2 * D].astype(bf16)
    v_all = qkv[:, 2 * D:].astype(bf16)

    # Stack heads onto the leading (batch) axis once per layer so the score and
    # context matmuls and the softmax are single batched ops over all heads.
    # Only lane slices, leading-dim reshapes and major-axis concats are used;
    # a (0,2,1,3) vector transpose is deliberately avoided (not reliably
    # lowered by Mosaic).
    # TODO(synk): switch to a single relayout (pltpu.einshape) once grouped
    # split specs are supported, removing the per-head slice/concat entirely.
    def stack_heads(m):                               # (N, D) -> (H*Bb, S, Dh)
        return jnp.concatenate(
            [m[:, hd * Dh:(hd + 1) * Dh].reshape(Bb, S, Dh) for hd in range(H)],
            axis=0)

    q = stack_heads(q_all)
    k = stack_heads(k_all)
    v = stack_heads(v_all)

    s = jnp.einsum('bqd,bkd->bqk', q, k, preferred_element_type=f32)
    s = s - jnp.max(s, axis=-1, keepdims=True)
    p = jnp.exp(s)
    # approx reciprocal on the EUP slot; ~2^-12 relative error vs exact softmax.
    p = p * pl.reciprocal(jnp.sum(p, axis=-1, keepdims=True), approx=True)
    ctx = jnp.einsum('bqk,bkd->bqd', p.astype(bf16), v,
                     preferred_element_type=f32)      # (H*Bb, S, Dh) f32
    # merge heads back to lanes: (H*Bb, S, Dh) -> (N, H*Dh) = (N, D)
    ctx = jnp.concatenate(
        [ctx[hd * Bb:(hd + 1) * Bb].reshape(N, Dh) for hd in range(H)], axis=-1)

    # packed per-layer vectors: rows = [bo, ln1w, ln1b, b2, ln2w, ln2b]
    lv = lvec_ref[...]

    # single fused output projection: (N, D) @ (D, D)
    attn = jnp.dot(ctx.astype(bf16), wo_ref[...],
                   preferred_element_type=f32) + lv[0:1]

    # residual + layernorm 1 (post-norm, norm_first=False)
    x1 = _layernorm(h + attn, lv[1:2], lv[2:3])

    # feed-forward, chunked over Dff so the (N, Dff) f32 intermediate is never
    # materialized in full (caps peak VMEM on v7x while keeping big batch tiles).
    Dff = w1_ref.shape[-1]
    nchunk = max(1, Dff // ff_block) if (ff_block and Dff % ff_block == 0) else 1
    cs = Dff // nchunk
    x1b = x1.astype(bf16)
    ff2 = None
    for c in range(nchunk):
        c0, c1 = c * cs, (c + 1) * cs
        f = jnp.dot(x1b, w1_ref[:, c0:c1], preferred_element_type=f32)
        f = jnp.maximum(f + b1_ref[:, c0:c1], 0.0).astype(bf16)
        part = jnp.dot(f, w2_ref[c0:c1, :], preferred_element_type=f32)
        ff2 = part if ff2 is None else ff2 + part
    ff2 = ff2 + lv[3:4]

    # residual + layernorm 2
    h_new = _layernorm(x1 + ff2, lv[4:5], lv[5:6])
    h_ref[...] = h_new

    # ---- final layer step: fused last-timestep Linear(D, 1) ----
    @pl.when(l == pl.num_programs(1) - 1)
    def _():
        h_last = h_new.reshape(Bb, S, D)[:, S - 1, :]            # (Bb, D)
        red = jnp.sum(h_last * dec_w_ref[...], axis=-1, keepdims=True)
        out_ref[...] = (red + dec_b_ref[0, 0]).reshape(Bb, 1, 1)


# ----------------------------- wrapper -----------------------------

def _pick_batch_block(B, S, target_rows=512):
    """Smallest divisor of B whose row count (batch_block*S) reaches ~target_rows
    so per-layer weight streaming is amortized over enough MXU work; when B*S is
    large this also yields nb >= 2 batch tiles for v7x megacore sharding."""
    for d in range(1, B + 1):
        if B % d == 0 and d * S >= target_rows:
            return d
    return B


def _vmem_limit_bytes():
    """~3/4 of physical VMEM (v5e/v6e: 128 MiB, v7x: 64 MiB), capped at 100 MiB.
    The default scoped limit (16-32 MiB) needlessly constrains tile sizes."""
    cap = 64 * 1024 * 1024
    try:
        cap = int(pltpu.get_tpu_info().vmem_capacity_bytes)
    except Exception:
        pass
    return int(min(cap * 3 // 4, 100 * 1024 * 1024))


def time_series_transformer(x, params, num_heads, *, batch_block=None,
                            ff_block=512):
    B, S, Din = x.shape
    D = params['wo'].shape[-1]
    L = params['wqkv'].shape[0]
    Dff = params['w1'].shape[-1]

    if batch_block is None:
        batch_block = _pick_batch_block(B, S)
    assert B % batch_block == 0
    nb = B // batch_block

    kernel = functools.partial(fused_forward_kernel, num_heads, batch_block, S,
                               ff_block)

    rep = lambda b, l: (0, 0)
    tile3 = lambda b, l: (b, 0, 0)
    per_layer = lambda b, l: (l, 0, 0)

    in_specs = [
        pl.BlockSpec((batch_block, S, Din), tile3),               # x
        pl.BlockSpec((Din, D), rep),                              # in_w
        pl.BlockSpec((1, D), rep),                                # in_b
        pl.BlockSpec((S, D), rep),                                # pe
        pl.BlockSpec((None, D, 3 * D), per_layer),                # wqkv
        pl.BlockSpec((None, 1, 3 * D), per_layer),                # bqkv
        pl.BlockSpec((None, D, D), per_layer),                    # wo
        pl.BlockSpec((None, 6, D), per_layer),                    # lvec (packed)
        pl.BlockSpec((None, D, Dff), per_layer),                  # w1
        pl.BlockSpec((None, 1, Dff), per_layer),                  # b1
        pl.BlockSpec((None, Dff, D), per_layer),                  # w2
        pl.BlockSpec((1, D), rep),                                # dec_w
        pl.BlockSpec(memory_space=pltpu.MemorySpace.SMEM),        # dec_b scalar
    ]
    out_specs = pl.BlockSpec((batch_block, 1, 1), tile3)

    out = pl.pallas_call(
        kernel,
        out_shape=jax.ShapeDtypeStruct((B, 1, 1), jnp.float32),
        grid_spec=pltpu.PrefetchScalarGridSpec(
            num_scalar_prefetch=0,
            grid=(nb, L),
            in_specs=in_specs,
            out_specs=out_specs,
            scratch_shapes=[pltpu.VMEM((batch_block * S, D), jnp.float32)],
        ),
        compiler_params=pltpu.CompilerParams(
            dimension_semantics=("parallel", "arbitrary"),
            vmem_limit_bytes=_vmem_limit_bytes(),
        ),
    )(x, params['in_w'], params['in_b'], params['pe'],
      params['wqkv'], params['bqkv'], params['wo'], params['lvec'],
      params['w1'], params['b1'], params['w2'],
      params['dec_w'], params['dec_b'])
    return out[:, 0, 0]                                  # .squeeze(-1)


# --------------------- params / positional encoding ---------------------

def make_pe(seq_len, d_model):
    position = jnp.arange(seq_len, dtype=jnp.float32)[:, None]
    div_term = jnp.exp(jnp.arange(0, d_model, 2, dtype=jnp.float32)
                       * (-math.log(10000.0) / d_model))
    pe = jnp.zeros((seq_len, d_model), jnp.float32)
    pe = pe.at[:, 0::2].set(jnp.sin(position * div_term))
    n_cos = pe[:, 1::2].shape[1]
    pe = pe.at[:, 1::2].set(jnp.cos(position * div_term[:n_cos]))
    return pe


def init_params(key, input_dim, model_dim, num_heads, num_layers, seq_len,
                dim_ff=2048):
    D = model_dim
    bf16 = jnp.bfloat16

    def nrm(k, shape, scale=0.05):
        return scale * jax.random.normal(k, shape, jnp.float32)

    keys = jax.random.split(key, 4 + num_layers)
    params = {
        'in_w': nrm(keys[0], (input_dim, D)).astype(bf16),  # Linear(in,D).weight.T
        'in_b': nrm(keys[1], (1, D)),
        'pe': make_pe(seq_len, D),
        'dec_w': nrm(keys[2], (1, D)),                       # Linear(D,1).weight
        'dec_b': nrm(keys[3], (1, 1)),
    }

    ones = jnp.ones((D,), jnp.float32)
    zeros = jnp.zeros((D,), jnp.float32)
    wqkv, bqkv, wo, w1, b1, w2, lvec = ([] for _ in range(7))
    for li in range(num_layers):
        lk = jax.random.split(keys[4 + li], 12)
        wq = nrm(lk[0], (D, D)); wk = nrm(lk[1], (D, D)); wv = nrm(lk[2], (D, D))
        bq = nrm(lk[3], (D,));  bk = nrm(lk[4], (D,));  bv = nrm(lk[5], (D,))
        wqkv.append(jnp.concatenate([wq, wk, wv], axis=1))   # (D, 3D)
        bqkv.append(jnp.concatenate([bq, bk, bv])[None, :])  # (1, 3D)
        wo.append(nrm(lk[6], (D, D)))                        # out_proj.weight.T
        bo = nrm(lk[7], (D,))
        w1.append(nrm(lk[8], (D, dim_ff)))
        b1.append(nrm(lk[9], (1, dim_ff)))
        w2.append(nrm(lk[10], (dim_ff, D)))
        b2 = nrm(lk[11], (D,))
        # packed small per-layer vectors: [bo, ln1w, ln1b, b2, ln2w, ln2b]
        lvec.append(jnp.stack([bo, ones, zeros, b2, ones, zeros]))

    params.update(
        wqkv=jnp.stack(wqkv).astype(bf16), bqkv=jnp.stack(bqkv),
        wo=jnp.stack(wo).astype(bf16),
        w1=jnp.stack(w1).astype(bf16), b1=jnp.stack(b1),
        w2=jnp.stack(w2).astype(bf16),
        lvec=jnp.stack(lvec),
    )
    return params


# ----------------------- pure-JAX reference (sanity) -----------------------

def reference_forward(x, params, num_heads):
    bf16, f32 = jnp.bfloat16, jnp.float32

    def mm(a, w):
        return jnp.dot(a.astype(bf16), w.astype(bf16), preferred_element_type=f32)

    def ln(v, w, b, eps=1e-5):
        mu = v.mean(-1, keepdims=True)
        var = ((v - mu) ** 2).mean(-1, keepdims=True)
        return (v - mu) / jnp.sqrt(var + eps) * w + b

    B, S, Din = x.shape
    D = params['wo'].shape[-1]
    H = num_heads
    Dh = D // H
    L = params['wqkv'].shape[0]
    scale = 1.0 / math.sqrt(Dh)

    h = mm(x.reshape(B * S, Din), params['in_w']) + params['in_b']
    h = (h.reshape(B, S, D) + params['pe'][None]).reshape(B * S, D)
    for li in range(L):
        lv = params['lvec'][li]
        qkv = mm(h, params['wqkv'][li]) + params['bqkv'][li]

        def heads(m):
            return m.reshape(B, S, H, Dh).transpose(0, 2, 1, 3)

        q = heads(qkv[:, :D] * scale)
        k = heads(qkv[:, D:2 * D])
        v = heads(qkv[:, 2 * D:])
        s = jnp.einsum('bhqd,bhkd->bhqk', q.astype(bf16), k.astype(bf16),
                       preferred_element_type=f32)
        p = jax.nn.softmax(s, axis=-1)
        ctx = jnp.einsum('bhqk,bhkd->bhqd', p.astype(bf16), v.astype(bf16),
                         preferred_element_type=f32)
        ctx = ctx.transpose(0, 2, 1, 3).reshape(B * S, D)
        attn = mm(ctx, params['wo'][li]) + lv[0]
        x1 = ln(h + attn, lv[1], lv[2])
        ff = jnp.maximum(mm(x1, params['w1'][li]) + params['b1'][li], 0.0)
        ff = mm(ff, params['w2'][li]) + lv[3]
        h = ln(x1 + ff, lv[4], lv[5])
    h_last = h.reshape(B, S, D)[:, -1, :]
    return jnp.sum(h_last * params['dec_w'], axis=-1) + params['dec_b'][0, 0]


# ----------------------------- main -----------------------------

if __name__ == "__main__":
    B, S, Din = 2, 8, 4
    Dm, H, L = 32, 4, 2

    key = jax.random.PRNGKey(0)
    kx, kp = jax.random.split(key)
    x = jax.random.normal(kx, (B, S, Din), jnp.float32)
    params = init_params(kp, Din, Dm, H, L, S)   # dim_feedforward defaults to 2048

    # default batch_block (auto-sized) and chunked FFN path (2048 / 512 chunks).
    y = time_series_transformer(x, params, H)
    y = jax.block_until_ready(y)

    y_ref = reference_forward(x, params, H)
    assert y.shape == (B,)
    # bf16 MXU inputs + approximate softmax reciprocal -> modest tolerance.
    assert jnp.allclose(y, y_ref, atol=1e-2, rtol=1e-2), (y, y_ref)

    print("KERNEL_OK")
</pallas_src>

<mosaic_0001>
module attributes {stable_mosaic.version = 11 : i64} {
  func.func @fused_forward_kernel(%arg0: i32, %arg1: i32, %arg2: memref<2x8x4xf32, #tpu.memory_space<vmem>>, %arg3: memref<4x32xbf16, #tpu.memory_space<vmem>>, %arg4: memref<1x32xf32, #tpu.memory_space<vmem>>, %arg5: memref<8x32xf32, #tpu.memory_space<vmem>>, %arg6: memref<1x32x96xbf16, #tpu.memory_space<vmem>>, %arg7: memref<1x1x96xf32, #tpu.memory_space<vmem>>, %arg8: memref<1x32x32xbf16, #tpu.memory_space<vmem>>, %arg9: memref<1x6x32xf32, #tpu.memory_space<vmem>>, %arg10: memref<1x32x2048xbf16, #tpu.memory_space<vmem>>, %arg11: memref<1x1x2048xf32, #tpu.memory_space<vmem>>, %arg12: memref<1x2048x32xbf16, #tpu.memory_space<vmem>>, %arg13: memref<1x32xf32, #tpu.memory_space<vmem>>, %arg14: memref<1x1xf32, #tpu.memory_space<smem>>, %arg15: memref<2x1x1xf32, #tpu.memory_space<vmem>>, %arg16: memref<16x32xf32, #tpu.memory_space<vmem>>) attributes {dimension_semantics = [#tpu.dimension_semantics<parallel>, #tpu.dimension_semantics<arbitrary>], iteration_bounds = array<i64: 1, 2>, scalar_prefetch = 0 : i64, scratch_operands = 1 : i64, tpu.core_type = #tpu.core_type<tc>, window_params = [{transform_indices = @transform_0, window_bounds = array<i64: 2, 8, 4>}, {pipeline_mode = #tpu.pipeline_mode<synchronous>, transform_indices = @transform_1, window_bounds = array<i64: 4, 32>}, {pipeline_mode = #tpu.pipeline_mode<synchronous>, transform_indices = @transform_2, window_bounds = array<i64: 1, 32>}, {pipeline_mode = #tpu.pipeline_mode<synchronous>, transform_indices = @transform_3, window_bounds = array<i64: 8, 32>}, {transform_indices = @transform_4, window_bounds = array<i64: 1, 32, 96>}, {transform_indices = @transform_5, window_bounds = array<i64: 1, 1, 96>}, {transform_indices = @transform_6, window_bounds = array<i64: 1, 32, 32>}, {transform_indices = @transform_7, window_bounds = array<i64: 1, 6, 32>}, {transform_indices = @transform_8, window_bounds = array<i64: 1, 32, 2048>}, {transform_indices = @transform_9, window_bounds = array<i64: 1, 1, 2048>}, {transform_indices = @transform_10, window_bounds = array<i64: 1, 2048, 32>}, {pipeline_mode = #tpu.pipeline_mode<synchronous>, transform_indices = @transform_11, window_bounds = array<i64: 1, 32>}, {transform_indices = @transform_12, window_bounds = array<i64: 1, 1>}, {transform_indices = @transform_13, window_bounds = array<i64: 2, 1, 1>}]} {
    %c0_i32 = arith.constant 0 : i32
    %0 = arith.cmpi eq, %arg1, %c0_i32 : i32
    %1 = arith.extui %0 : i1 to i32
    %c0_i32_0 = arith.constant 0 : i32
    %2 = arith.cmpi ne, %1, %c0_i32_0 : i32
    scf.if %2 {
      %c0_78 = arith.constant 0 : index
      %c0_79 = arith.constant 0 : index
      %c0_80 = arith.constant 0 : index
      %191 = vector.load %arg2[%c0_78, %c0_79, %c0_80] : memref<2x8x4xf32, #tpu.memory_space<vmem>>, vector<2x8x4xf32>
      %192 = vector.shape_cast %191 : vector<2x8x4xf32> to vector<16x4xf32>
      %193 = arith.truncf %192 : vector<16x4xf32> to vector<16x4xbf16>
      %c0_81 = arith.constant 0 : index
      %c0_82 = arith.constant 0 : index
      %194 = vector.load %arg3[%c0_81, %c0_82] : memref<4x32xbf16, #tpu.memory_space<vmem>>, vector<4x32xbf16>
      %cst_83 = arith.constant dense<0.000000e+00> : vector<16x32xf32>
      %195 = tpu.matmul %193, %194, %cst_83 {dimension_numbers = #tpu.dot_dimension_numbers<[1], [0], [0], [1], [0, 0, 1, 1], [], []>} : vector<16x4xbf16>, vector<4x32xbf16>, vector<16x32xf32> -> vector<16x32xf32>
      %c0_84 = arith.constant 0 : index
      %c0_85 = arith.constant 0 : index
      %196 = vector.load %arg4[%c0_84, %c0_85] : memref<1x32xf32, #tpu.memory_space<vmem>>, vector<1x32xf32>
      %197 = vector.broadcast %196 : vector<1x32xf32> to vector<16x32xf32>
      %198 = arith.addf %195, %197 : vector<16x32xf32>
      %199 = vector.shape_cast %198 : vector<16x32xf32> to vector<2x8x32xf32>
      %c0_86 = arith.constant 0 : index
      %c0_87 = arith.constant 0 : index
      %200 = vector.load %arg5[%c0_86, %c0_87] : memref<8x32xf32, #tpu.memory_space<vmem>>, vector<8x32xf32>
      %201 = vector.shape_cast %200 : vector<8x32xf32> to vector<1x8x32xf32>
      %202 = vector.broadcast %201 : vector<1x8x32xf32> to vector<2x8x32xf32>
      %203 = arith.addf %199, %202 : vector<2x8x32xf32>
      %204 = vector.shape_cast %203 : vector<2x8x32xf32> to vector<16x32xf32>
      %c0_88 = arith.constant 0 : index
      %c0_89 = arith.constant 0 : index
      %205 = vector.load %arg16[%c0_88, %c0_89] : memref<16x32xf32, #tpu.memory_space<vmem>>, vector<16x32xf32>
      tpu.vector_store %arg16[%c0_88, %c0_89], %204 {strides = array<i32>} : memref<16x32xf32, #tpu.memory_space<vmem>>, vector<16x32xf32>,
    } else {
    }
    %c0 = arith.constant 0 : index
    %c0_1 = arith.constant 0 : index
    %3 = vector.load %arg16[%c0, %c0_1] : memref<16x32xf32, #tpu.memory_space<vmem>>, vector<16x32xf32>
    %4 = arith.truncf %3 : vector<16x32xf32> to vector<16x32xbf16>
    %c0_2 = arith.constant 0 : index
    %c0_3 = arith.constant 0 : index
    %c0_4 = arith.constant 0 : index
    %5 = vector.load %arg6[%c0_2, %c0_3, %c0_4] : memref<1x32x96xbf16, #tpu.memory_space<vmem>>, vector<1x32x96xbf16>
    %6 = vector.shape_cast %5 : vector<1x32x96xbf16> to vector<32x96xbf16>
    %cst = arith.constant dense<0.000000e+00> : vector<16x96xf32>
    %7 = tpu.matmul %4, %6, %cst {dimension_numbers = #tpu.dot_dimension_numbers<[1], [0], [0], [1], [0, 0, 1, 1], [], []>} : vector<16x32xbf16>, vector<32x96xbf16>, vector<16x96xf32> -> vector<16x96xf32>
    %c0_5 = arith.constant 0 : index
    %c0_6 = arith.constant 0 : index
    %c0_7 = arith.constant 0 : index
    %8 = vector.load %arg7[%c0_5, %c0_6, %c0_7] : memref<1x1x96xf32, #tpu.memory_space<vmem>>, vector<1x1x96xf32>
    %9 = vector.shape_cast %8 : vector<1x1x96xf32> to vector<1x96xf32>
    %10 = vector.broadcast %9 : vector<1x96xf32> to vector<16x96xf32>
    %11 = arith.addf %7, %10 : vector<16x96xf32>
    %12 = vector.extract_strided_slice %11 {offsets = [0, 0], sizes = [16, 32], strides = [1, 1]} : vector<16x96xf32> to vector<16x32xf32>
    %cst_8 = arith.constant 0.353553385 : f32
    %13 = vector.broadcast %cst_8 : f32 to vector<16x32xf32>
    %14 = arith.mulf %12, %13 : vector<16x32xf32>
    %15 = arith.truncf %14 : vector<16x32xf32> to vector<16x32xbf16>
    %16 = vector.extract_strided_slice %11 {offsets = [0, 32], sizes = [16, 32], strides = [1, 1]} : vector<16x96xf32> to vector<16x32xf32>
    %17 = arith.truncf %16 : vector<16x32xf32> to vector<16x32xbf16>
    %18 = vector.extract_strided_slice %11 {offsets = [0, 64], sizes = [16, 32], strides = [1, 1]} : vector<16x96xf32> to vector<16x32xf32>
    %19 = arith.truncf %18 : vector<16x32xf32> to vector<16x32xbf16>
    %20 = vector.extract_strided_slice %15 {offsets = [0, 0], sizes = [16, 8], strides = [1, 1]} : vector<16x32xbf16> to vector<16x8xbf16>
    %21 = vector.shape_cast %20 : vector<16x8xbf16> to vector<2x8x8xbf16>
    %22 = vector.extract_strided_slice %15 {offsets = [0, 8], sizes = [16, 8], strides = [1, 1]} : vector<16x32xbf16> to vector<16x8xbf16>
    %23 = vector.shape_cast %22 : vector<16x8xbf16> to vector<2x8x8xbf16>
    %24 = vector.extract_strided_slice %15 {offsets = [0, 16], sizes = [16, 8], strides = [1, 1]} : vector<16x32xbf16> to vector<16x8xbf16>
    %25 = vector.shape_cast %24 : vector<16x8xbf16> to vector<2x8x8xbf16>
    %26 = vector.extract_strided_slice %15 {offsets = [0, 24], sizes = [16, 8], strides = [1, 1]} : vector<16x32xbf16> to vector<16x8xbf16>
    %27 = vector.shape_cast %26 : vector<16x8xbf16> to vector<2x8x8xbf16>
    %28 = tpu.concatenate %21, %23, %25, %27 in 0 : vector<2x8x8xbf16>, vector<2x8x8xbf16>, vector<2x8x8xbf16>, vector<2x8x8xbf16> -> vector<8x8x8xbf16>
    %29 = vector.extract_strided_slice %17 {offsets = [0, 0], sizes = [16, 8], strides = [1, 1]} : vector<16x32xbf16> to vector<16x8xbf16>
    %30 = vector.shape_cast %29 : vector<16x8xbf16> to vector<2x8x8xbf16>
    %31 = vector.extract_strided_slice %17 {offsets = [0, 8], sizes = [16, 8], strides = [1, 1]} : vector<16x32xbf16> to vector<16x8xbf16>
    %32 = vector.shape_cast %31 : vector<16x8xbf16> to vector<2x8x8xbf16>
    %33 = vector.extract_strided_slice %17 {offsets = [0, 16], sizes = [16, 8], strides = [1, 1]} : vector<16x32xbf16> to vector<16x8xbf16>
    %34 = vector.shape_cast %33 : vector<16x8xbf16> to vector<2x8x8xbf16>
    %35 = vector.extract_strided_slice %17 {offsets = [0, 24], sizes = [16, 8], strides = [1, 1]} : vector<16x32xbf16> to vector<16x8xbf16>
    %36 = vector.shape_cast %35 : vector<16x8xbf16> to vector<2x8x8xbf16>
    %37 = tpu.concatenate %30, %32, %34, %36 in 0 : vector<2x8x8xbf16>, vector<2x8x8xbf16>, vector<2x8x8xbf16>, vector<2x8x8xbf16> -> vector<8x8x8xbf16>
    %38 = vector.extract_strided_slice %19 {offsets = [0, 0], sizes = [16, 8], strides = [1, 1]} : vector<16x32xbf16> to vector<16x8xbf16>
    %39 = vector.shape_cast %38 : vector<16x8xbf16> to vector<2x8x8xbf16>
    %40 = vector.extract_strided_slice %19 {offsets = [0, 8], sizes = [16, 8], strides = [1, 1]} : vector<16x32xbf16> to vector<16x8xbf16>
    %41 = vector.shape_cast %40 : vector<16x8xbf16> to vector<2x8x8xbf16>
    %42 = vector.extract_strided_slice %19 {offsets = [0, 16], sizes = [16, 8], strides = [1, 1]} : vector<16x32xbf16> to vector<16x8xbf16>
    %43 = vector.shape_cast %42 : vector<16x8xbf16> to vector<2x8x8xbf16>
    %44 = vector.extract_strided_slice %19 {offsets = [0, 24], sizes = [16, 8], strides = [1, 1]} : vector<16x32xbf16> to vector<16x8xbf16>
    %45 = vector.shape_cast %44 : vector<16x8xbf16> to vector<2x8x8xbf16>
    %46 = tpu.concatenate %39, %41, %43, %45 in 0 : vector<2x8x8xbf16>, vector<2x8x8xbf16>, vector<2x8x8xbf16>, vector<2x8x8xbf16> -> vector<8x8x8xbf16>
    "tpu.trace_start"() <{level = 10 : i32, message = "bqd,bkd->bqk"}> : () -> ()
    %cst_9 = arith.constant dense<0.000000e+00> : vector<8x8x8xf32>
    %47 = tpu.matmul %28, %37, %cst_9 {dimension_numbers = #tpu.dot_dimension_numbers<[2], [2], [1], [1], [0, 0, 0, 1, 1, 1], [0], [0]>} : vector<8x8x8xbf16>, vector<8x8x8xbf16>, vector<8x8x8xf32> -> vector<8x8x8xf32>
    "tpu.trace_stop"() : () -> ()
    %cst_10 = arith.constant dense<0xFF800000> : vector<8x8xf32>
    %48 = vector.multi_reduction <maximumf>, %47, %cst_10 [2] : vector<8x8x8xf32> to vector<8x8xf32>
    %49 = vector.shape_cast %48 : vector<8x8xf32> to vector<8x8x1xf32>
    %50 = vector.broadcast %49 : vector<8x8x1xf32> to vector<8x8x8xf32>
    %51 = arith.subf %47, %50 : vector<8x8x8xf32>
    %52 = math.exp %51 : vector<8x8x8xf32>
    %cst_11 = arith.constant dense<0.000000e+00> : vector<8x8xf32>
    %53 = vector.multi_reduction <add>, %52, %cst_11 [2] : vector<8x8x8xf32> to vector<8x8xf32>
    %54 = vector.shape_cast %53 : vector<8x8xf32> to vector<8x8x1xf32>
    %55 = tpu.reciprocal %54 {approx = true} : vector<8x8x1xf32> -> vector<8x8x1xf32>
    %56 = vector.broadcast %55 : vector<8x8x1xf32> to vector<8x8x8xf32>
    %57 = arith.mulf %52, %56 : vector<8x8x8xf32>
    %58 = arith.truncf %57 : vector<8x8x8xf32> to vector<8x8x8xbf16>
    "tpu.trace_start"() <{level = 10 : i32, message = "bqk,bkd->bqd"}> : () -> ()
    %cst_12 = arith.constant dense<0.000000e+00> : vector<8x8x8xf32>
    %59 = tpu.matmul %58, %46, %cst_12 {dimension_numbers = #tpu.dot_dimension_numbers<[2], [1], [1], [2], [0, 0, 0, 1, 1, 2], [0], [0]>} : vector<8x8x8xbf16>, vector<8x8x8xbf16>, vector<8x8x8xf32> -> vector<8x8x8xf32>
    "tpu.trace_stop"() : () -> ()
    %60 = vector.extract_strided_slice %59 {offsets = [0, 0, 0], sizes = [2, 8, 8], strides = [1, 1, 1]} : vector<8x8x8xf32> to vector<2x8x8xf32>
    %61 = vector.shape_cast %60 : vector<2x8x8xf32> to vector<16x8xf32>
    %62 = vector.extract_strided_slice %59 {offsets = [2, 0, 0], sizes = [2, 8, 8], strides = [1, 1, 1]} : vector<8x8x8xf32> to vector<2x8x8xf32>
    %63 = vector.shape_cast %62 : vector<2x8x8xf32> to vector<16x8xf32>
    %64 = vector.extract_strided_slice %59 {offsets = [4, 0, 0], sizes = [2, 8, 8], strides = [1, 1, 1]} : vector<8x8x8xf32> to vector<2x8x8xf32>
    %65 = vector.shape_cast %64 : vector<2x8x8xf32> to vector<16x8xf32>
    %66 = vector.extract_strided_slice %59 {offsets = [6, 0, 0], sizes = [2, 8, 8], strides = [1, 1, 1]} : vector<8x8x8xf32> to vector<2x8x8xf32>
    %67 = vector.shape_cast %66 : vector<2x8x8xf32> to vector<16x8xf32>
    %68 = tpu.concatenate %61, %63, %65, %67 in 1 : vector<16x8xf32>, vector<16x8xf32>, vector<16x8xf32>, vector<16x8xf32> -> vector<16x32xf32>
    %c0_13 = arith.constant 0 : index
    %c0_14 = arith.constant 0 : index
    %c0_15 = arith.constant 0 : index
    %69 = vector.load %arg9[%c0_13, %c0_14, %c0_15] : memref<1x6x32xf32, #tpu.memory_space<vmem>>, vector<1x6x32xf32>
    %70 = vector.shape_cast %69 : vector<1x6x32xf32> to vector<6x32xf32>
    %71 = arith.truncf %68 : vector<16x32xf32> to vector<16x32xbf16>
    %c0_16 = arith.constant 0 : index
    %c0_17 = arith.constant 0 : index
    %c0_18 = arith.constant 0 : index
    %72 = vector.load %arg8[%c0_16, %c0_17, %c0_18] : memref<1x32x32xbf16, #tpu.memory_space<vmem>>, vector<1x32x32xbf16>
    %73 = vector.shape_cast %72 : vector<1x32x32xbf16> to vector<32x32xbf16>
    %cst_19 = arith.constant dense<0.000000e+00> : vector<16x32xf32>
    %74 = tpu.matmul %71, %73, %cst_19 {dimension_numbers = #tpu.dot_dimension_numbers<[1], [0], [0], [1], [0, 0, 1, 1], [], []>} : vector<16x32xbf16>, vector<32x32xbf16>, vector<16x32xf32> -> vector<16x32xf32>
    %75 = vector.extract_strided_slice %70 {offsets = [0, 0], sizes = [1, 32], strides = [1, 1]} : vector<6x32xf32> to vector<1x32xf32>
    %76 = vector.broadcast %75 : vector<1x32xf32> to vector<16x32xf32>
    %77 = arith.addf %74, %76 : vector<16x32xf32>
    %78 = arith.addf %3, %77 : vector<16x32xf32>
    %79 = vector.extract_strided_slice %70 {offsets = [1, 0], sizes = [1, 32], strides = [1, 1]} : vector<6x32xf32> to vector<1x32xf32>
    %80 = vector.extract_strided_slice %70 {offsets = [2, 0], sizes = [1, 32], strides = [1, 1]} : vector<6x32xf32> to vector<1x32xf32>
    %cst_20 = arith.constant dense<0.000000e+00> : vector<16xf32>
    %81 = vector.multi_reduction <add>, %78, %cst_20 [1] : vector<16x32xf32> to vector<16xf32>
    %82 = vector.shape_cast %81 : vector<16xf32> to vector<16x1xf32>
    %cst_21 = arith.constant 3.200000e+01 : f32
    %83 = vector.broadcast %cst_21 : f32 to vector<16x1xf32>
    %84 = arith.divf %82, %83 : vector<16x1xf32>
    %85 = vector.broadcast %84 : vector<16x1xf32> to vector<16x32xf32>
    %86 = arith.subf %78, %85 : vector<16x32xf32>
    %87 = arith.mulf %86, %86 : vector<16x32xf32>
    %cst_22 = arith.constant dense<0.000000e+00> : vector<16xf32>
    %88 = vector.multi_reduction <add>, %87, %cst_22 [1] : vector<16x32xf32> to vector<16xf32>
    %89 = vector.shape_cast %88 : vector<16xf32> to vector<16x1xf32>
    %cst_23 = arith.constant 3.200000e+01 : f32
    %90 = vector.broadcast %cst_23 : f32 to vector<16x1xf32>
    %91 = arith.divf %89, %90 : vector<16x1xf32>
    %92 = vector.broadcast %84 : vector<16x1xf32> to vector<16x32xf32>
    %93 = arith.subf %78, %92 : vector<16x32xf32>
    %cst_24 = arith.constant 9.99999974E-6 : f32
    %94 = vector.broadcast %cst_24 : f32 to vector<16x1xf32>
    %95 = arith.addf %91, %94 : vector<16x1xf32>
    %96 = math.rsqrt %95 : vector<16x1xf32>
    %97 = vector.broadcast %96 : vector<16x1xf32> to vector<16x32xf32>
    %98 = arith.mulf %93, %97 : vector<16x32xf32>
    %99 = vector.broadcast %79 : vector<1x32xf32> to vector<16x32xf32>
    %100 = arith.mulf %98, %99 : vector<16x32xf32>
    %101 = vector.broadcast %80 : vector<1x32xf32> to vector<16x32xf32>
    %102 = arith.addf %100, %101 : vector<16x32xf32>
    %103 = arith.truncf %102 : vector<16x32xf32> to vector<16x32xbf16>
    %c0_25 = arith.constant 0 : index
    %c0_26 = arith.constant 0 : index
    %c0_27 = arith.constant 0 : index
    %104 = vector.load %arg10[%c0_25, %c0_26, %c0_27] : memref<1x32x2048xbf16, #tpu.memory_space<vmem>>, vector<1x32x512xbf16>
    %105 = vector.shape_cast %104 : vector<1x32x512xbf16> to vector<32x512xbf16>
    %cst_28 = arith.constant dense<0.000000e+00> : vector<16x512xf32>
    %106 = tpu.matmul %103, %105, %cst_28 {dimension_numbers = #tpu.dot_dimension_numbers<[1], [0], [0], [1], [0, 0, 1, 1], [], []>} : vector<16x32xbf16>, vector<32x512xbf16>, vector<16x512xf32> -> vector<16x512xf32>
    %c0_29 = arith.constant 0 : index
    %c0_30 = arith.constant 0 : index
    %c0_31 = arith.constant 0 : index
    %107 = vector.load %arg11[%c0_29, %c0_30, %c0_31] : memref<1x1x2048xf32, #tpu.memory_space<vmem>>, vector<1x1x512xf32>
    %108 = vector.shape_cast %107 : vector<1x1x512xf32> to vector<1x512xf32>
    %109 = vector.broadcast %108 : vector<1x512xf32> to vector<16x512xf32>
    %110 = arith.addf %106, %109 : vector<16x512xf32>
    %cst_32 = arith.constant 0.000000e+00 : f32
    %111 = vector.broadcast %cst_32 : f32 to vector<16x512xf32>
    %112 = arith.maximumf %110, %111 : vector<16x512xf32>
    %113 = arith.truncf %112 : vector<16x512xf32> to vector<16x512xbf16>
    %c0_33 = arith.constant 0 : index
    %c0_34 = arith.constant 0 : index
    %c0_35 = arith.constant 0 : index
    %114 = vector.load %arg12[%c0_33, %c0_34, %c0_35] : memref<1x2048x32xbf16, #tpu.memory_space<vmem>>, vector<1x512x32xbf16>
    %115 = vector.shape_cast %114 : vector<1x512x32xbf16> to vector<512x32xbf16>
    %cst_36 = arith.constant dense<0.000000e+00> : vector<16x32xf32>
    %116 = tpu.matmul %113, %115, %cst_36 {dimension_numbers = #tpu.dot_dimension_numbers<[1], [0], [0], [1], [0, 0, 1, 1], [], []>} : vector<16x512xbf16>, vector<512x32xbf16>, vector<16x32xf32> -> vector<16x32xf32>
    %c0_37 = arith.constant 0 : index
    %c0_38 = arith.constant 0 : index
    %c512 = arith.constant 512 : index
    %117 = vector.load %arg10[%c0_37, %c0_38, %c512] : memref<1x32x2048xbf16, #tpu.memory_space<vmem>>, vector<1x32x512xbf16>
    %118 = vector.shape_cast %117 : vector<1x32x512xbf16> to vector<32x512xbf16>
    %cst_39 = arith.constant dense<0.000000e+00> : vector<16x512xf32>
    %119 = tpu.matmul %103, %118, %cst_39 {dimension_numbers = #tpu.dot_dimension_numbers<[1], [0], [0], [1], [0, 0, 1, 1], [], []>} : vector<16x32xbf16>, vector<32x512xbf16>, vector<16x512xf32> -> vector<16x512xf32>
    %c0_40 = arith.constant 0 : index
    %c0_41 = arith.constant 0 : index
    %c512_42 = arith.constant 512 : index
    %120 = vector.load %arg11[%c0_40, %c0_41, %c512_42] : memref<1x1x2048xf32, #tpu.memory_space<vmem>>, vector<1x1x512xf32>
    %121 = vector.shape_cast %120 : vector<1x1x512xf32> to vector<1x512xf32>
    %122 = vector.broadcast %121 : vector<1x512xf32> to vector<16x512xf32>
    %123 = arith.addf %119, %122 : vector<16x512xf32>
    %cst_43 = arith.constant 0.000000e+00 : f32
    %124 = vector.broadcast %cst_43 : f32 to vector<16x512xf32>
    %125 = arith.maximumf %123, %124 : vector<16x512xf32>
    %126 = arith.truncf %125 : vector<16x512xf32> to vector<16x512xbf16>
    %c0_44 = arith.constant 0 : index
    %c512_45 = arith.constant 512 : index
    %c0_46 = arith.constant 0 : index
    %127 = vector.load %arg12[%c0_44, %c512_45, %c0_46] : memref<1x2048x32xbf16, #tpu.memory_space<vmem>>, vector<1x512x32xbf16>
    %128 = vector.shape_cast %127 : vector<1x512x32xbf16> to vector<512x32xbf16>
    %cst_47 = arith.constant dense<0.000000e+00> : vector<16x32xf32>
    %129 = tpu.matmul %126, %128, %cst_47 {dimension_numbers = #tpu.dot_dimension_numbers<[1], [0], [0], [1], [0, 0, 1, 1], [], []>} : vector<16x512xbf16>, vector<512x32xbf16>, vector<16x32xf32> -> vector<16x32xf32>
    %130 = arith.addf %116, %129 : vector<16x32xf32>
    %c0_48 = arith.constant 0 : index
    %c0_49 = arith.constant 0 : index
    %c1024 = arith.constant 1024 : index
    %131 = vector.load %arg10[%c0_48, %c0_49, %c1024] : memref<1x32x2048xbf16, #tpu.memory_space<vmem>>, vector<1x32x512xbf16>
    %132 = vector.shape_cast %131 : vector<1x32x512xbf16> to vector<32x512xbf16>
    %cst_50 = arith.constant dense<0.000000e+00> : vector<16x512xf32>
    %133 = tpu.matmul %103, %132, %cst_50 {dimension_numbers = #tpu.dot_dimension_numbers<[1], [0], [0], [1], [0, 0, 1, 1], [], []>} : vector<16x32xbf16>, vector<32x512xbf16>, vector<16x512xf32> -> vector<16x512xf32>
    %c0_51 = arith.constant 0 : index
    %c0_52 = arith.constant 0 : index
    %c1024_53 = arith.constant 1024 : index
    %134 = vector.load %arg11[%c0_51, %c0_52, %c1024_53] : memref<1x1x2048xf32, #tpu.memory_space<vmem>>, vector<1x1x512xf32>
    %135 = vector.shape_cast %134 : vector<1x1x512xf32> to vector<1x512xf32>
    %136 = vector.broadcast %135 : vector<1x512xf32> to vector<16x512xf32>
    %137 = arith.addf %133, %136 : vector<16x512xf32>
    %cst_54 = arith.constant 0.000000e+00 : f32
    %138 = vector.broadcast %cst_54 : f32 to vector<16x512xf32>
    %139 = arith.maximumf %137, %138 : vector<16x512xf32>
    %140 = arith.truncf %139 : vector<16x512xf32> to vector<16x512xbf16>
    %c0_55 = arith.constant 0 : index
    %c1024_56 = arith.constant 1024 : index
    %c0_57 = arith.constant 0 : index
    %141 = vector.load %arg12[%c0_55, %c1024_56, %c0_57] : memref<1x2048x32xbf16, #tpu.memory_space<vmem>>, vector<1x512x32xbf16>
    %142 = vector.shape_cast %141 : vector<1x512x32xbf16> to vector<512x32xbf16>
    %cst_58 = arith.constant dense<0.000000e+00> : vector<16x32xf32>
    %143 = tpu.matmul %140, %142, %cst_58 {dimension_numbers = #tpu.dot_dimension_numbers<[1], [0], [0], [1], [0, 0, 1, 1], [], []>} : vector<16x512xbf16>, vector<512x32xbf16>, vector<16x32xf32> -> vector<16x32xf32>
    %144 = arith.addf %130, %143 : vector<16x32xf32>
    %c0_59 = arith.constant 0 : index
    %c0_60 = arith.constant 0 : index
    %c1536 = arith.constant 1536 : index
    %145 = vector.load %arg10[%c0_59, %c0_60, %c1536] : memref<1x32x2048xbf16, #tpu.memory_space<vmem>>, vector<1x32x512xbf16>
    %146 = vector.shape_cast %145 : vector<1x32x512xbf16> to vector<32x512xbf16>
    %cst_61 = arith.constant dense<0.000000e+00> : vector<16x512xf32>
    %147 = tpu.matmul %103, %146, %cst_61 {dimension_numbers = #tpu.dot_dimension_numbers<[1], [0], [0], [1], [0, 0, 1, 1], [], []>} : vector<16x32xbf16>, vector<32x512xbf16>, vector<16x512xf32> -> vector<16x512xf32>
    %c0_62 = arith.constant 0 : index
    %c0_63 = arith.constant 0 : index
    %c1536_64 = arith.constant 1536 : index
    %148 = vector.load %arg11[%c0_62, %c0_63, %c1536_64] : memref<1x1x2048xf32, #tpu.memory_space<vmem>>, vector<1x1x512xf32>
    %149 = vector.shape_cast %148 : vector<1x1x512xf32> to vector<1x512xf32>
    %150 = vector.broadcast %149 : vector<1x512xf32> to vector<16x512xf32>
    %151 = arith.addf %147, %150 : vector<16x512xf32>
    %cst_65 = arith.constant 0.000000e+00 : f32
    %152 = vector.broadcast %cst_65 : f32 to vector<16x512xf32>
    %153 = arith.maximumf %151, %152 : vector<16x512xf32>
    %154 = arith.truncf %153 : vector<16x512xf32> to vector<16x512xbf16>
    %c0_66 = arith.constant 0 : index
    %c1536_67 = arith.constant 1536 : index
    %c0_68 = arith.constant 0 : index
    %155 = vector.load %arg12[%c0_66, %c1536_67, %c0_68] : memref<1x2048x32xbf16, #tpu.memory_space<vmem>>, vector<1x512x32xbf16>
    %156 = vector.shape_cast %155 : vector<1x512x32xbf16> to vector<512x32xbf16>
    %cst_69 = arith.constant dense<0.000000e+00> : vector<16x32xf32>
    %157 = tpu.matmul %154, %156, %cst_69 {dimension_numbers = #tpu.dot_dimension_numbers<[1], [0], [0], [1], [0, 0, 1, 1], [], []>} : vector<16x512xbf16>, vector<512x32xbf16>, vector<16x32xf32> -> vector<16x32xf32>
    %158 = arith.addf %144, %157 : vector<16x32xf32>
    %159 = vector.extract_strided_slice %70 {offsets = [3, 0], sizes = [1, 32], strides = [1, 1]} : vector<6x32xf32> to vector<1x32xf32>
    %160 = vector.broadcast %159 : vector<1x32xf32> to vector<16x32xf32>
    %161 = arith.addf %158, %160 : vector<16x32xf32>
    %162 = arith.addf %102, %161 : vector<16x32xf32>
    %163 = vector.extract_strided_slice %70 {offsets = [4, 0], sizes = [1, 32], strides = [1, 1]} : vector<6x32xf32> to vector<1x32xf32>
    %164 = vector.extract_strided_slice %70 {offsets = [5, 0], sizes = [1, 32], strides = [1, 1]} : vector<6x32xf32> to vector<1x32xf32>
    %cst_70 = arith.constant dense<0.000000e+00> : vector<16xf32>
    %165 = vector.multi_reduction <add>, %162, %cst_70 [1] : vector<16x32xf32> to vector<16xf32>
    %166 = vector.shape_cast %165 : vector<16xf32> to vector<16x1xf32>
    %cst_71 = arith.constant 3.200000e+01 : f32
    %167 = vector.broadcast %cst_71 : f32 to vector<16x1xf32>
    %168 = arith.divf %166, %167 : vector<16x1xf32>
    %169 = vector.broadcast %168 : vector<16x1xf32> to vector<16x32xf32>
    %170 = arith.subf %162, %169 : vector<16x32xf32>
    %171 = arith.mulf %170, %170 : vector<16x32xf32>
    %cst_72 = arith.constant dense<0.000000e+00> : vector<16xf32>
    %172 = vector.multi_reduction <add>, %171, %cst_72 [1] : vector<16x32xf32> to vector<16xf32>
    %173 = vector.shape_cast %172 : vector<16xf32> to vector<16x1xf32>
    %cst_73 = arith.constant 3.200000e+01 : f32
    %174 = vector.broadcast %cst_73 : f32 to vector<16x1xf32>
    %175 = arith.divf %173, %174 : vector<16x1xf32>
    %176 = vector.broadcast %168 : vector<16x1xf32> to vector<16x32xf32>
    %177 = arith.subf %162, %176 : vector<16x32xf32>
    %cst_74 = arith.constant 9.99999974E-6 : f32
    %178 = vector.broadcast %cst_74 : f32 to vector<16x1xf32>
    %179 = arith.addf %175, %178 : vector<16x1xf32>
    %180 = math.rsqrt %179 : vector<16x1xf32>
    %181 = vector.broadcast %180 : vector<16x1xf32> to vector<16x32xf32>
    %182 = arith.mulf %177, %181 : vector<16x32xf32>
    %183 = vector.broadcast %163 : vector<1x32xf32> to vector<16x32xf32>
    %184 = arith.mulf %182, %183 : vector<16x32xf32>
    %185 = vector.broadcast %164 : vector<1x32xf32> to vector<16x32xf32>
    %186 = arith.addf %184, %185 : vector<16x32xf32>
    %c0_75 = arith.constant 0 : index
    %c0_76 = arith.constant 0 : index
    %187 = vector.load %arg16[%c0_75, %c0_76] : memref<16x32xf32, #tpu.memory_space<vmem>>, vector<16x32xf32>
    tpu.vector_store %arg16[%c0_75, %c0_76], %186 {strides = array<i32>} : memref<16x32xf32, #tpu.memory_space<vmem>>, vector<16x32xf32>,
    %c1_i32 = arith.constant 1 : i32
    %188 = arith.cmpi eq, %arg1, %c1_i32 : i32
    %189 = arith.extui %188 : i1 to i32
    %c0_i32_77 = arith.constant 0 : i32
    %190 = arith.cmpi ne, %189, %c0_i32_77 : i32
    scf.if %190 {
      %191 = vector.shape_cast %186 : vector<16x32xf32> to vector<2x8x32xf32>
      %192 = vector.extract_strided_slice %191 {offsets = [0, 7, 0], sizes = [2, 1, 32], strides = [1, 1, 1]} : vector<2x8x32xf32> to vector<2x1x32xf32>
      %193 = vector.shape_cast %192 : vector<2x1x32xf32> to vector<2x32xf32>
      %c0_78 = arith.constant 0 : index
      %c0_79 = arith.constant 0 : index
      %194 = vector.load %arg13[%c0_78, %c0_79] : memref<1x32xf32, #tpu.memory_space<vmem>>, vector<1x32xf32>
      %195 = vector.broadcast %194 : vector<1x32xf32> to vector<2x32xf32>
      %196 = arith.mulf %193, %195 : vector<2x32xf32>
      %cst_80 = arith.constant dense<0.000000e+00> : vector<2xf32>
      %197 = vector.multi_reduction <add>, %196, %cst_80 [1] : vector<2x32xf32> to vector<2xf32>
      %198 = vector.shape_cast %197 : vector<2xf32> to vector<2x1xf32>
      %c0_81 = arith.constant 0 : index
      %c0_82 = arith.constant 0 : index
      %199 = memref.load %arg14[%c0_81, %c0_82] : memref<1x1xf32, #tpu.memory_space<smem>>
      %200 = vector.broadcast %199 : f32 to vector<2x1xf32>
      %201 = arith.addf %198, %200 : vector<2x1xf32>
      %202 = vector.shape_cast %201 : vector<2x1xf32> to vector<2x1x1xf32>
      %c0_83 = arith.constant 0 : index
      %c0_84 = arith.constant 0 : index
      %c0_85 = arith.constant 0 : index
      %203 = vector.load %arg15[%c0_83, %c0_84, %c0_85] : memref<2x1x1xf32, #tpu.memory_space<vmem>>, vector<2x1x1xf32>
      tpu.vector_store %arg15[%c0_83, %c0_84, %c0_85], %202 {strides = array<i32>} : memref<2x1x1xf32, #tpu.memory_space<vmem>>, vector<2x1x1xf32>,
    } else {
    }
    return
  }
  func.func @transform_0(%arg0: i32, %arg1: i32) -> (i32, i32, i32) {
    %c0_i32 = arith.constant 0 : i32
    %c0_i32_0 = arith.constant 0 : i32
    %c0_i32_1 = arith.constant 0 : i32
    return %arg0, %c0_i32, %c0_i32_0 : i32, i32, i32
  }
  func.func @transform_1(%arg0: i32, %arg1: i32) -> (i32, i32) {
    %c0_i32 = arith.constant 0 : i32
    %c0_i32_0 = arith.constant 0 : i32
    %c0_i32_1 = arith.constant 0 : i32
    return %c0_i32, %c0_i32_0 : i32, i32
  }
  func.func @transform_2(%arg0: i32, %arg1: i32) -> (i32, i32) {
    %c0_i32 = arith.constant 0 : i32
    %c0_i32_0 = arith.constant 0 : i32
    %c0_i32_1 = arith.constant 0 : i32
    return %c0_i32, %c0_i32_0 : i32, i32
  }
  func.func @transform_3(%arg0: i32, %arg1: i32) -> (i32, i32) {
    %c0_i32 = arith.constant 0 : i32
    %c0_i32_0 = arith.constant 0 : i32
    %c0_i32_1 = arith.constant 0 : i32
    return %c0_i32, %c0_i32_0 : i32, i32
  }
  func.func @transform_4(%arg0: i32, %arg1: i32) -> (i32, i32, i32) {
    %c0_i32 = arith.constant 0 : i32
    %c0_i32_0 = arith.constant 0 : i32
    %c0_i32_1 = arith.constant 0 : i32
    return %arg1, %c0_i32, %c0_i32_0 : i32, i32, i32
  }
  func.func @transform_5(%arg0: i32, %arg1: i32) -> (i32, i32, i32) {
    %c0_i32 = arith.constant 0 : i32
    %c0_i32_0 = arith.constant 0 : i32
    %c0_i32_1 = arith.constant 0 : i32
    return %arg1, %c0_i32, %c0_i32_0 : i32, i32, i32
  }
  func.func @transform_6(%arg0: i32, %arg1: i32) -> (i32, i32, i32) {
    %c0_i32 = arith.constant 0 : i32
    %c0_i32_0 = arith.constant 0 : i32
    %c0_i32_1 = arith.constant 0 : i32
    return %arg1, %c0_i32, %c0_i32_0 : i32, i32, i32
  }
  func.func @transform_7(%arg0: i32, %arg1: i32) -> (i32, i32, i32) {
    %c0_i32 = arith.constant 0 : i32
    %c0_i32_0 = arith.constant 0 : i32
    %c0_i32_1 = arith.constant 0 : i32
    return %arg1, %c0_i32, %c0_i32_0 : i32, i32, i32
  }
  func.func @transform_8(%arg0: i32, %arg1: i32) -> (i32, i32, i32) {
    %c0_i32 = arith.constant 0 : i32
    %c0_i32_0 = arith.constant 0 : i32
    %c0_i32_1 = arith.constant 0 : i32
    return %arg1, %c0_i32, %c0_i32_0 : i32, i32, i32
  }
  func.func @transform_9(%arg0: i32, %arg1: i32) -> (i32, i32, i32) {
    %c0_i32 = arith.constant 0 : i32
    %c0_i32_0 = arith.constant 0 : i32
    %c0_i32_1 = arith.constant 0 : i32
    return %arg1, %c0_i32, %c0_i32_0 : i32, i32, i32
  }
  func.func @transform_10(%arg0: i32, %arg1: i32) -> (i32, i32, i32) {
    %c0_i32 = arith.constant 0 : i32
    %c0_i32_0 = arith.constant 0 : i32
    %c0_i32_1 = arith.constant 0 : i32
    return %arg1, %c0_i32, %c0_i32_0 : i32, i32, i32
  }
  func.func @transform_11(%arg0: i32, %arg1: i32) -> (i32, i32) {
    %c0_i32 = arith.constant 0 : i32
    %c0_i32_0 = arith.constant 0 : i32
    %c0_i32_1 = arith.constant 0 : i32
    return %c0_i32, %c0_i32_0 : i32, i32
  }
  func.func @transform_12(%arg0: i32, %arg1: i32) -> (i32, i32) {
    %c0_i32 = arith.constant 0 : i32
    %c0_i32_0 = arith.constant 0 : i32
    %c0_i32_1 = arith.constant 0 : i32
    return %c0_i32, %c0_i32_0 : i32, i32
  }
  func.func @transform_13(%arg0: i32, %arg1: i32) -> (i32, i32, i32) {
    %c0_i32 = arith.constant 0 : i32
    %c0_i32_0 = arith.constant 0 : i32
    %c0_i32_1 = arith.constant 0 : i32
    return %arg0, %c0_i32, %c0_i32_0 : i32, i32, i32
  }
}

</mosaic_0001>

<bundles_post_ra>
// kernel: tpu_custom_call.1
= control target key start
LH: loop header
LB: loop body
LE: loop exit
PB: predicated region body
PF: predicated region fallthrough
CT: control target
= control target key end

     0   :  { %s4949_s27 = smov 0   ;;  %s4951_s28 = smov 0   ;;  %s5553_s0 = inlined_call_operand.vmem [shape: f32[2,8,4], index: 0, kind: input, shape index: {}]   ;;  %s5554_s1 = inlined_call_operand.vmem [shape: bf16[4,32], index: 1, kind: input, shape index: {}]   ;;  %s5555_s2 = inlined_call_operand.vmem [shape: f32[1,32], index: 2, kind: input, shape index: {}]   ;;  %s5556_s3 = inlined_call_operand.vmem [shape: f32[8,32], index: 3, kind: input, shape index: {}]   ;;  %s5557_s4 = inlined_call_operand.vmem [shape: bf16[2,32,96], index: 4, kind: input, shape index: {}]   ;;  %s5558_s5 = inlined_call_operand.vmem [shape: f32[2,1,96], index: 5, kind: input, shape index: {}]   ;;  %s5559_s6 = inlined_call_operand.vmem [shape: bf16[2,32,32], index: 6, kind: input, shape index: {}]   ;;  %s5560_s7 = inlined_call_operand.vmem [shape: f32[2,6,32], index: 7, kind: input, shape index: {}]   ;;  %s5561_s8 = inlined_call_operand.vmem [shape: bf16[2,32,2048], index: 8, kind: input, shape index: {}]   ;;  %s5562_s9 = inlined_call_operand.vmem [shape: f32[2,1,2048], index: 9, kind: input, shape index: {}]   ;;  %s5563_s10 = inlined_call_operand.vmem [shape: bf16[2,2048,32], index: 10, kind: input, shape index: {}]   ;;  %s5564_s11 = inlined_call_operand.vmem [shape: f32[1,32], index: 11, kind: input, shape index: {}]   ;;  %s5565_s12 = inlined_call_operand.<no memory space> [shape: f32[1,1], index: 12, kind: input, shape index: {}]   ;;  %s5566_s13 = inlined_call_operand.vmem [shape: f32[2,1,1], index: 13, kind: output, shape index: {}]  }
   0x1   :  { %5569 = sst [smem:[#allocation7_spill]] %s5557_s4  ;;  %s4953_s29 = smov 0  }
   0x2   :  { %5570 = sst [smem:[#allocation8_spill]] %s5559_s6 }
   0x3   :  { %18 = sst [smem:[#allocation3]] %s5565_s12 }
   0x4 LB: > { %5571 = sst [smem:[#allocation4_spill]] %s4857_s28  ;;  %s33_s12 = sadd.s32 1, %s4857_s28  ;;  %s4861_s29 = sphi %s4953_s29, %s24_s29   ;;  %s4857_s28 = sphi %s4951_s28, %s5579_s28   ;;  %s4853_s27 = sphi %s4949_s27, %s5578_s27  }
   0x5   : > { %5572 = sst [smem:[#allocation5_spill]] %s4861_s29  ;;  %p4049_p0 = scmp.ge.s32.totalorder %s4861_s29, 1 }
   0x6   : > { %p34_p1 = scmp.ge.s32.totalorder %s33_s12, 2  ;;  %p467_p2 = scmp.lt.s32.totalorder %s4861_s29, 3 }
   0x8   : > { %s5581_s12 = smov (%p34_p1, %s33_s12), 0  ;;  %p468_p3 = pnand %p4049_p0, %p467_p2 }
   0x9   : > { %5573 = sst [smem:[#allocation6_spill]] %s5581_s12  ;;  %p547_p4 = scmp.lt.s32.totalorder (!%p468_p3), %s4853_s27, 1 }
   0xa   : > { %471 = sbr.rel (%p468_p3) target bundleno = 3421 (0xd5d), region = 72  ;;  %s5574_s4 = sld [smem:[#allocation7_spill]] (!%p468_p3) }
   0xb   : > { %s5575_s6 = sld [smem:[#allocation8_spill]] (!%p468_p3)  ;;  %p4060_p5 = scmp.ne.s32.totalorder (!%p468_p3), %s4853_s27, 0 }
   0xf   : > { %s4971_s30 = scalar_select %p547_p4, %s4853_s27, 1 }
  0x11   : > { %s4270_s14 = sshll.u32 %s4971_s30, 4  ;;  %s4054_s24 = sshll.u32 %s4971_s30, 3 }
  0x12   : > { %s4981_s20 = scalar_lea.vmem %s5574_s4, %s4270_s14  ;;  %s4986_s23 = scalar_lea.vmem %s5575_s6, %s4270_s14 }
  0x13   : > { %s4272_s25 = sshll.u32 %s4971_s30, 8  ;;  %s4993_s28 = scalar_lea.vmem %s5560_s7, %s4054_s24 }
  0x14   : > { %s4998_s16 = scalar_lea.vmem %s5561_s8, %s4272_s25  ;;  %s5003_s17 = scalar_lea.vmem %s5562_s9, %s4270_s14 }
  0x15   : > { %s4273_s21 = sshll.u32 %s4971_s30, 10  ;;  %587 = sbr.rel (%p4060_p5) target bundleno = 233 (0xe9), region = 76 }
  0x16   : > { %s5009_s6 = scalar_lea.vmem %s5563_s10, %s4273_s21 }
  0x1a   : > { %v591_v0 = vld [vmem:[%s5554_s1] sm:$0x3]  ;;  %vm603_vm0 = vcmask 1041408   ;;  %v4863_v2 = vmov 0.0   ;;  %vm4864_vm1 = vmmov 0   ;;  %v589_v4 = vld [vmem:[%s5553_s0 + $0x8] sm:$0xff] }
  0x1b   : > { %v588_v1 = vld [vmem:[%s5553_s0] sm:$0xff]  ;;  %4494 = vmatprep.subr.bf16.mxu0 %v4863_v2  ;;  %v605_v3 = vsel %vm603_vm0, %v591_v0, 0  ;;  %4496 = vmatprep.mubr.msk.bf16.mxu0 %vm4864_vm1, %v4863_v2  ;;  %vm599_vm2 = vcmask 31744   ;;  %vm651_vm3 = vcmask 261120  }
  0x1c   : > { %4495 = vmatpush3.bf16.msra.mxu0 %v605_v3  ;;  %v590_v5 = vpack.c.bf16 %v589_v4, %v588_v1  ;;  %v4061_v6 = vld [vmem:[%s5555_s2] ss:$0 sm:$0xff] }
  0x1d   : > { %v648_v8 = vld [vmem:[%s5556_s3] sm:$0xff] }
  0x1f   : > { %4497 = vmatmul.mubr.msk.bf16.vlgmr.msra.gmra.mxu0 %vm599_vm2, %v590_v5 }
  0xdf   : > { %v641_v7 = vpop.f32.mrf.mxu0 }
  0xe0   : > { %v642_v9 = vadd.f32 %v4061_v6, %v641_v7 }
  0xe1   : > { %v4498_v10 = vpop.f32.mrf.mxu0 }
  0xe2   : > { %v649_v11 = vadd.f32 %v648_v8, %v642_v9 }
  0xe3   : > { %v644_v12 = vpop.f32.mrf.mxu0 }
  0xe4   : > { %652 = vst.msk [vmem:[#allocation2] sm:$0xff] %vm651_vm3, %v649_v11  ;;  %v645_v13 = vadd.f32 %v4061_v6, %v644_v12 }
  0xe5   : > { %v4499_v14 = vpop.f32.mrf.mxu0 }
  0xe6   : > { %v650_v15 = vadd.f32 %v648_v8, %v645_v13 }
  0xe8   : > { %653 = vst.msk [vmem:[#allocation2 + $0x8] sm:$0xff] %vm651_vm3, %v650_v15 }
  0xe9 PF: > { %v4664_v16 = vld [vmem:[%s4981_s20 + $0x8] sm:$0xff]   ;;  %v4865_v17 = vmov 0.0   ;;  %v4665_v18 = vld [vmem:[%s4981_s20] sm:$0xff]   ;;  %vm4866_vm4 = vmmov 0   ;;  %vm680_vm5 = vcmask 261120   ;;  %s5576_s22 = scalar_lea.vmem %s5558_s5, %s4971_s30  ;;  %s4867_s12 = smov 112  }
  0xea   : > { %4500 = vmatprep.subr.bf16.mxu0 %v4865_v17  ;;  %4508 = vmatprep.subr.bf16.mxu1 %v4865_v17  ;;  %v4063_v22 = vld [vmem:[%s5576_s22] ss:$0 sm:$0xff]  ;;  %s4868_s24 = smov 120   ;;  %s4869_s30 = smov 104   ;;  %vm765_vm6 = vcmask 64512   ;;  %vm1261_vm7 = vcmask 1043456  }
  0xeb   : > { %4501 = vmatpush3.bf16.msra.mxu0 %v4664_v16  ;;  %4504 = vmatprep.mubr.msk.bf16.mxu0 %vm4866_vm4, %v4865_v17  ;;  %v654_v19 = vld [vmem:[#allocation2] sm:$0xff]  ;;  %s4870_s29 = smov 96   ;;  %s4871_s25 = smov 64   ;;  %vm1667_vm8 = vcmask 130048   ;;  %vm1670_vm9 = vcmask 195584  }
  0xec   : > { %4502 = vmatprep.subr.bf16.mxu0 %v4865_v17  ;;  %4510 = vmatprep.mubr.msk.bf16.mxu1 %vm4866_vm4, %v4865_v17  ;;  %s4872_s4 = smov 8   ;;  %s4873_s14 = smov 16  }
  0xed   : > { %s4874_s26 = smov 24   ;;  %p4264_p6 = scmp.ne.s32.totalorder %s4853_s27, 1 }
  0xef   : > { %v655_v20 = vld [vmem:[#allocation2 + $0x8] sm:$0xff]  ;;  %4503 = vmatpush3.bf16.msra.mxu0 %v4665_v18 }
  0xf0   : > { %v656_v21 = vpack.c.bf16 %v655_v20, %v654_v19  ;;  %4514 = vmatprep.subr.bf16.mxu0 %v4865_v17 }
  0xf2   : > { %4505 = vmatmul.mubr.msk.bf16.vlgmr.msra.gmra.mxu0 %vm680_vm5, %v656_v21 }
  0xf3   : > { %4516 = vmatprep.mubr.msk.bf16.mxu0 %vm4866_vm4, %v4865_v17 }
 0x1b2   : > { %v718_v23 = vpop.f32.mrf.mxu0 }
 0x1b3   : > { %v719_v24 = vadd.f32 %v4063_v22, %v718_v23 }
 0x1b4   : > { %v4506_v25 = vpop.f32.mrf.mxu0 }
 0x1b5   : > { %v4276_v26 = vpack.c.bf16 %v719_v24, %v719_v24  ;;  %v725_v33 = vmul.f32 0.35355338, %v719_v24 }
 0x1b6   : > { %v721_v27 = vpop.f32.mrf.mxu0 }
 0x1b7   : > { %v722_v28 = vadd.f32 %v4063_v22, %v721_v27  ;;  %755 = vrot.lane.b32.xlu1 %v4276_v26, %s4867_s12  ;;  %751 = vrot.lane.b32.xlu0 %v4276_v26, %s4868_s24  ;;  %v4274_v37 = vpack.c.bf16 %v725_v33, %v725_v33 }
 0x1b8   : > { %v4507_v29 = vpop.f32.mrf.mxu0 }
 0x1b9   : > { %v5047_v30 = vpack.c.bf16 %v722_v28, %v722_v28  ;;  %v726_v38 = vmul.f32 0.35355338, %v722_v28 }
 0x1bb   : > { %757 = vrot.lane.b32.xlu1 %v5047_v30, %s4867_s12  ;;  %753 = vrot.lane.b32.xlu0 %v5047_v30, %s4868_s24  ;;  %v4275_v42 = vpack.c.bf16 %v726_v38, %v726_v38 }
 0x1bf   : > { %761 = vrot.lane.b32.xlu1 %v5047_v30, %s4869_s30  ;;  %759 = vrot.lane.b32.xlu0 %v4276_v26, %s4869_s30 }
 0x1c3   : > { %812 = vrot.lane.b32.xlu1 %v5047_v30, %s4870_s29  ;;  %763 = vrot.lane.b32.xlu0 %v4276_v26, %s4870_s29 }
 0x229   : > { %v756_v31 = vpop.permute.xlu1 %755  ;;  %v752_v32 = vpop.permute.xlu0 %751 }
 0x22a   : > { %v5059_v34 = vcombine.low %v752_v32, %v752_v32  ;;  %v5068_v43 = vcombine.low %v756_v31, %v756_v31 }
 0x22c   : > { %862 = vrot.lane.b32.xlu0 %v5059_v34, %s4870_s29 }
 0x22d   : > { %v758_v35 = vpop.permute.xlu1 %757  ;;  %v754_v36 = vpop.permute.xlu0 %753 }
 0x22e   : > { %v5063_v39 = vcombine.low %v754_v36, %v754_v36  ;;  %v5073_v46 = vcombine.low %v758_v35, %v758_v35 }
 0x230   : > { %734 = vrot.lane.b32.xlu0 %v4274_v37, %s4868_s24  ;;  %912 = vrot.lane.b32.xlu1 %v5063_v39, %s4870_s29 }
 0x231   : > { %v762_v40 = vpop.permute.xlu1 %761  ;;  %v760_v41 = vpop.permute.xlu0 %759 }
 0x232   : > { %v5082_v49 = vcombine.low %v760_v41, %v760_v41  ;;  %v5087_v50 = vcombine.low %v762_v40, %v762_v40 }
 0x234   : > { %962 = vrot.lane.b32.xlu0 %v5068_v43, %s4870_s29  ;;  %736 = vrot.lane.b32.xlu1 %v4275_v42, %s4868_s24 }
 0x235   : > { %v813_v44 = vpop.permute.xlu1 %812  ;;  %v764_v45 = vpop.permute.xlu0 %763 }
 0x236   : > { %v818_v47 = vsel %vm765_vm6, %v813_v44, 0  ;;  %v770_v48 = vsel %vm765_vm6, %v764_v45, 0 }
 0x237   : > { %4509 = vmatpush3.bf16.xpose.msra.mxu1 %v770_v48  ;;  %4515 = vmatpush3.bf16.xpose.msra.mxu0 %v818_v47 }
 0x238   : > { %738 = vrot.lane.b32.xlu0 %v4274_v37, %s4867_s12  ;;  %1012 = vrot.lane.b32.xlu1 %v5073_v46, %s4870_s29 }
 0x239   : > { %4520 = vmatprep.subr.bf16.mxu1 %v4865_v17  ;;  %4526 = vmatprep.subr.bf16.mxu0 %v4865_v17 }
 0x23c   : > { %1062 = vrot.lane.b32.xlu0 %v5082_v49, %s4870_s29  ;;  %740 = vrot.lane.b32.xlu1 %v4275_v42, %s4867_s12 }
 0x23e   : > { %4511 = vmatmul.mubr.msk.bf16.vlgmr.msra.gmra.mxu1 %vm765_vm6, %v4274_v37  ;;  %4517 = vmatmul.mubr.msk.bf16.vlgmr.msra.gmra.mxu0 %vm765_vm6, %v4275_v42 }
 0x23f   : > { %4522 = vmatprep.mubr.msk.bf16.mxu1 %vm4866_vm4, %v4865_v17  ;;  %4528 = vmatprep.mubr.msk.bf16.mxu0 %vm4866_vm4, %v4865_v17 }
 0x240   : > { %742 = vrot.lane.b32.xlu0 %v4274_v37, %s4869_s30  ;;  %1112 = vrot.lane.b32.xlu1 %v5087_v50, %s4870_s29 }
 0x244   : > { %744 = vrot.lane.b32.xlu1 %v4275_v42, %s4869_s30 }
 0x248   : > { %1256 = vrot.lane.b32.xlu1 %v4276_v26, %s4871_s25 }
 0x29e   : > { %v863_v51 = vpop.permute.xlu0 %862 }
 0x29f   : > { %v868_v52 = vsel %vm765_vm6, %v863_v51, 0 }
 0x2a0   : > { %4521 = vmatpush3.bf16.xpose.msra.mxu1 %v868_v52 }
 0x2a1   : > { %4532 = vmatprep.subr.bf16.mxu1 %v4865_v17 }
 0x2a2   : > { %v913_v53 = vpop.permute.xlu1 %912  ;;  %v735_v54 = vpop.permute.xlu0 %734 }
 0x2a3   : > { %v918_v55 = vsel %vm765_vm6, %v913_v53, 0 }
 0x2a4   : > { %4527 = vmatpush3.bf16.xpose.msra.mxu0 %v918_v55 }
 0x2a5   : > { %4538 = vmatprep.subr.bf16.mxu0 %v4865_v17 }
 0x2a6   : > { %v963_v56 = vpop.permute.xlu0 %962  ;;  %v737_v57 = vpop.permute.xlu1 %736 }
 0x2a7   : > { %v968_v58 = vsel %vm765_vm6, %v963_v56, 0  ;;  %4523 = vmatmul.mubr.msk.bf16.vlgmr.msra.gmra.mxu1 %vm765_vm6, %v735_v54 }
 0x2a8   : > { %4533 = vmatpush3.bf16.xpose.msra.mxu1 %v968_v58  ;;  %4534 = vmatprep.mubr.msk.bf16.mxu1 %vm4866_vm4, %v4865_v17 }
 0x2a9   : > { %4544 = vmatprep.subr.bf16.mxu1 %v4865_v17 }
 0x2aa   : > { %v739_v59 = vpop.permute.xlu0 %738  ;;  %v1013_v60 = vpop.permute.xlu1 %1012 }
 0x2ab   : > { %v1018_v61 = vsel %vm765_vm6, %v1013_v60, 0  ;;  %4529 = vmatmul.mubr.msk.bf16.vlgmr.msra.gmra.mxu0 %vm765_vm6, %v737_v57 }
 0x2ac   : > { %4539 = vmatpush3.bf16.xpose.msra.mxu0 %v1018_v61  ;;  %4540 = vmatprep.mubr.msk.bf16.mxu0 %vm4866_vm4, %v4865_v17 }
 0x2ad   : > { %4550 = vmatprep.subr.bf16.mxu0 %v4865_v17 }
 0x2ae   : > { %v1063_v62 = vpop.permute.xlu0 %1062  ;;  %v741_v63 = vpop.permute.xlu1 %740 }
 0x2af   : > { %v1068_v0 = vsel %vm765_vm6, %v1063_v62, 0  ;;  %4535 = vmatmul.mubr.msk.bf16.vlgmr.msra.gmra.mxu1 %vm765_vm6, %v739_v59 }
 0x2b0   : > { %4545 = vmatpush3.bf16.xpose.msra.mxu1 %v1068_v0  ;;  %4546 = vmatprep.mubr.msk.bf16.mxu1 %vm4866_vm4, %v4865_v17 }
 0x2b1   : > { %4556 = vmatprep.subr.bf16.mxu1 %v4865_v17 }
 0x2b2   : > { %v1113_v1 = vpop.permute.xlu1 %1112  ;;  %v743_v3 = vpop.permute.xlu0 %742 }
 0x2b3   : > { %v1118_v2 = vsel %vm765_vm6, %v1113_v1, 0  ;;  %4541 = vmatmul.mubr.msk.bf16.vlgmr.msra.gmra.mxu0 %vm765_vm6, %v741_v63 }
 0x2b4   : > { %4551 = vmatpush3.bf16.xpose.msra.mxu0 %v1118_v2  ;;  %4552 = vmatprep.mubr.msk.bf16.mxu0 %vm4866_vm4, %v4865_v17 }
 0x2b5   : > { %4562 = vmatprep.subr.bf16.mxu0 %v4865_v17 }
 0x2b6   : > { %v745_v4 = vpop.permute.xlu1 %744 }
 0x2b7   : > { %4547 = vmatmul.mubr.msk.bf16.vlgmr.msra.gmra.mxu1 %vm765_vm6, %v743_v3 }
 0x2b8   : > { %4558 = vmatprep.mubr.msk.bf16.mxu1 %vm4866_vm4, %v4865_v17 }
 0x2ba   : > { %v1257_v5 = vpop.permute.xlu1 %1256 }
 0x2bb   : > { %v1263_v6 = vsel %vm1261_vm7, %v1257_v5, 0  ;;  %4553 = vmatmul.mubr.msk.bf16.vlgmr.msra.gmra.mxu0 %vm765_vm6, %v745_v4 }
 0x2bc   : > { %4557 = vmatpush3.bf16.msra.mxu1 %v1263_v6  ;;  %4564 = vmatprep.mubr.msk.bf16.mxu0 %vm4866_vm4, %v4865_v17 }
 0x2bd   : > { %4568 = vmatprep.subr.bf16.mxu1 %v4865_v17 }
 0x2fe   : > { %v806_v7 = vpop.f32.mrf.mxu1  ;;  %v854_v8 = vpop.f32.mrf.mxu0 }
 0x2ff   : > { %v1160_v9 = vsel %vm765_vm6, %v806_v7, -inf  ;;  %v1163_v10 = vsel %vm765_vm6, %v854_v8, -inf }
 0x300   : > { %1161 = vmax.xlane.f32.xlu0 %v1160_v9  ;;  %v4512_v11 = vpop.f32.mrf.mxu1  ;;  %1164 = vmax.xlane.f32.xlu1 %v1163_v10  ;;  %v4518_v12 = vpop.f32.mrf.mxu0 }
 0x302   : > { %v809_v13 = vpop.f32.mrf.mxu1  ;;  %v857_v14 = vpop.f32.mrf.mxu0 }
 0x304   : > { %v4513_v15 = vpop.f32.mrf.mxu1  ;;  %v4519_v16 = vpop.f32.mrf.mxu0 }
 0x367   : > { %v904_v18 = vpop.f32.mrf.mxu1 }
 0x368   : > { %v1166_v19 = vsel %vm765_vm6, %v904_v18, -inf }
 0x369   : > { %1167 = vmax.xlane.f32.xlu0 %v1166_v19  ;;  %v4524_v20 = vpop.f32.mrf.mxu1 }
 0x36b   : > { %v907_v21 = vpop.f32.mrf.mxu1  ;;  %v954_v22 = vpop.f32.mrf.mxu0 }
 0x36c   : > { %v1169_v23 = vsel %vm765_vm6, %v954_v22, -inf }
 0x36d   : > { %v4525_v24 = vpop.f32.mrf.mxu1  ;;  %1170 = vmax.xlane.f32.xlu0 %v1169_v23  ;;  %v4530_v25 = vpop.f32.mrf.mxu0 }
 0x36f   : > { %v957_v26 = vpop.f32.mrf.mxu0  ;;  %v5136_v27 = vpop.f32.mrf.mxu1 }
 0x370   : > { %v1172_v28 = vsel %vm765_vm6, %v5136_v27, -inf }
 0x371   : > { %v4536_v29 = vpop.f32.mrf.mxu1  ;;  %1173 = vmax.xlane.f32.xlu1 %v1172_v28  ;;  %v4531_v31 = vpop.f32.mrf.mxu0 }
 0x373   : > { %v1007_v32 = vpop.f32.mrf.mxu1  ;;  %v5140_v33 = vpop.f32.mrf.mxu0 }
 0x374   : > { %v1175_v35 = vsel %vm765_vm6, %v5140_v33, -inf }
 0x375   : > { %v4537_v36 = vpop.f32.mrf.mxu1  ;;  %1176 = vmax.xlane.f32.xlu0 %v1175_v35  ;;  %v4542_v37 = vpop.f32.mrf.mxu0 }
 0x377   : > { %v1057_v38 = vpop.f32.mrf.mxu0  ;;  %v1104_v40 = vpop.f32.mrf.mxu1 }
 0x378   : > { %v1178_v41 = vsel %vm765_vm6, %v1104_v40, -inf }
 0x379   : > { %v4548_v42 = vpop.f32.mrf.mxu1  ;;  %1179 = vmax.xlane.f32.xlu1 %v1178_v41  ;;  %v4543_v44 = vpop.f32.mrf.mxu0 }
 0x37b   : > { %v1107_v45 = vpop.f32.mrf.mxu1  ;;  %v1154_v47 = vpop.f32.mrf.mxu0 }
 0x37c   : > { %v1181_v48 = vsel %vm765_vm6, %v1154_v47, -inf }
 0x37d   : > { %v4549_v51 = vpop.f32.mrf.mxu1  ;;  %1182 = vmax.xlane.f32.xlu0 %v1181_v48  ;;  %v4554_v52 = vpop.f32.mrf.mxu0 }
 0x37f   : > { %v1157_v53 = vpop.f32.mrf.mxu0 }
 0x381   : > { %v4555_v54 = vpop.f32.mrf.mxu0 }
 0x389   : > { %v1162_v55 = vpop.xlane.xlu0 %1161  ;;  %v1165_v56 = vpop.xlane.xlu1 %1164 }
 0x38a   : > { %1353 = vrot.lane.b32.xlu1 %v5059_v34, %s4871_s25  ;;  %v1184_v57 = vsub.f32 %v806_v7, %v1162_v55  ;;  %v1185_v58 = vsub.f32 %v854_v8, %v1165_v56 }
 0x38c   : > { %v1192_v59 = vmul.f32 1.442695, %v1184_v57  ;;  %v1194_v60 = vmul.f32 1.442695, %v1185_v58 }
 0x38e   : > { %1401 = vrot.lane.b32.xlu1 %v5063_v39, %s4871_s25  ;;  %4796 = vpow2.f32 %v1192_v59 }
 0x38f   : > { %4798 = vpow2.f32 %v1194_v60 }
 0x393   : > { %1305 = vrot.lane.b32.xlu0 %v5047_v30, %s4871_s25 }
 0x39b   : > { %v4797_v61 = vpop.eup %4796 }
 0x39c   : > { %v4799_v62 = vpop.eup %4798  ;;  %v1208_v63 = vsel %vm765_vm6, %v4797_v61, 0.0 }
 0x39d   : > { %v1211_v34 = vsel %vm765_vm6, %v4799_v62, 0.0 }
 0x3b2   : > { %1209 = vadd.xlane.f32.xlu1 %v1208_v63  ;;  %1212 = vadd.xlane.f32.xlu0 %v1211_v34 }
 0x3f2   : > { %v1168_v39 = vpop.xlane.xlu0 %1167 }
 0x3f3   : > { %v1186_v0 = vsub.f32 %v904_v18, %v1168_v39 }
 0x3f5   : > { %v1196_v1 = vmul.f32 1.442695, %v1186_v0 }
 0x3f6   : > { %v1171_v30 = vpop.xlane.xlu0 %1170 }
 0x3f7   : > { %4800 = vpow2.f32 %v1196_v1  ;;  %v1187_v2 = vsub.f32 %v954_v22, %v1171_v30 }
 0x3f9   : > { %v1198_v3 = vmul.f32 1.442695, %v1187_v2 }
 0x3fa   : > { %v1174_v12 = vpop.xlane.xlu1 %1173 }
 0x3fb   : > { %4802 = vpow2.f32 %v1198_v3  ;;  %v1188_v13 = vsub.f32 %v5136_v27, %v1174_v12 }
 0x3fd   : > { %v1200_v16 = vmul.f32 1.442695, %v1188_v13 }
 0x3fe   : > { %v1177_v4 = vpop.xlane.xlu0 %1176 }
 0x3ff   : > { %v1189_v15 = vsub.f32 %v5140_v33, %v1177_v4  ;;  %4804 = vpow2.f32 %v1200_v16 }
 0x401   : > { %v1202_v19 = vmul.f32 1.442695, %v1189_v15 }
 0x402   : > { %v1180_v14 = vpop.xlane.xlu1 %1179 }
 0x403   : > { %v1190_v18 = vsub.f32 %v1104_v40, %v1180_v14  ;;  %4806 = vpow2.f32 %v1202_v19 }
 0x404   : > { %v5154_v5 = vpop.eup %4800 }
 0x405   : > { %v1214_v6 = vsel %vm765_vm6, %v5154_v5, 0.0  ;;  %v1204_v20 = vmul.f32 1.442695, %v1190_v18 }
 0x406   : > { %1215 = vadd.xlane.f32.xlu1 %v1214_v6  ;;  %v1183_v7 = vpop.xlane.xlu0 %1182  ;;  %v1354_v23 = vpop.permute.xlu1 %1353 }
 0x407   : > { %v1191_v21 = vsub.f32 %v1154_v47, %v1183_v7  ;;  %4808 = vpow2.f32 %v1204_v20  ;;  %v1359_v42 = vsel %vm1261_vm7, %v1354_v23, 0 }
 0x408   : > { %v5158_v8 = vpop.eup %4802 }
 0x409   : > { %v1217_v9 = vsel %vm765_vm6, %v5158_v8, 0.0  ;;  %v1206_v22 = vmul.f32 1.442695, %v1191_v21 }
 0x40a   : > { %1218 = vadd.xlane.f32.xlu0 %v1217_v9  ;;  %v1306_v10 = vpop.permute.xlu0 %1305  ;;  %v1402_v24 = vpop.permute.xlu1 %1401 }
 0x40b   : > { %v1311_v11 = vsel %vm1261_vm7, %v1306_v10, 0  ;;  %4810 = vpow2.f32 %v1206_v22  ;;  %v1407_v44 = vsel %vm1261_vm7, %v1402_v24, 0 }
 0x40c   : > { %4563 = vmatpush3.bf16.msra.mxu0 %v1311_v11 }
 0x40d   : > { %4574 = vmatprep.subr.bf16.mxu0 %v4865_v17 }
 0x417   : > { %1497 = vrot.lane.b32.xlu1 %v5073_v46, %s4871_s25  ;;  %v5170_v46 = vpop.eup %4804 }
 0x418   : > { %v1220_v25 = vsel %vm765_vm6, %v5170_v46, 0.0 }
 0x420   : > { %1449 = vrot.lane.b32.xlu0 %v5068_v43, %s4871_s25  ;;  %v5172_v43 = vpop.eup %4806 }
 0x421   : > { %v5176_v26 = vpop.eup %4808  ;;  %v1223_v31 = vsel %vm765_vm6, %v5172_v43, 0.0 }
 0x422   : > { %v1226_v29 = vsel %vm765_vm6, %v5176_v26, 0.0  ;;  %v5182_v32 = vpop.eup %4810 }
 0x423   : > { %v1229_v33 = vsel %vm765_vm6, %v5182_v32, 0.0 }
 0x43b   : > { %1221 = vadd.xlane.f32.xlu1 %v1220_v25  ;;  %v1210_v27 = vpop.xlane.xlu1 %1209  ;;  %v1213_v28 = vpop.xlane.xlu0 %1212 }
 0x43c   : > { %4812 = vrcp.f32 %v1210_v27  ;;  %v4666_v27 = vld [vmem:[%s4986_s23 + $0x8] sm:$0xff]  }
 0x43d   : > { %4814 = vrcp.f32 %v1213_v28 }
 0x43f   : > { %1227 = vadd.xlane.f32.xlu1 %v1226_v29  ;;  %1224 = vadd.xlane.f32.xlu0 %v1223_v31 }
 0x443   : > { %1230 = vadd.xlane.f32.xlu0 %v1229_v33 }
 0x449   : > { %v4813_v35 = vpop.eup %4812 }
 0x44a   : > { %v4815_v36 = vpop.eup %4814  ;;  %v1240_v37 = vmul.f32 %v4813_v35, %v4797_v61 }
 0x44b   : > { %v1241_v38 = vmul.f32 %v4815_v36, %v4799_v62 }
 0x44c   : > { %v1248_v40 = vpack.c.bf16 %v1240_v37, %v1240_v37 }
 0x44d   : > { %v1249_v41 = vpack.c.bf16 %v1241_v38, %v1241_v38 }
 0x44e   : > { %4559 = vmatmul.mubr.msk.bf16.vlgmr.msra.gmra.mxu1 %vm765_vm6, %v1248_v40 }
 0x44f   : > { %4565 = vmatmul.mubr.msk.bf16.vlgmr.msra.gmra.mxu0 %vm765_vm6, %v1249_v41  ;;  %4569 = vmatpush3.bf16.msra.mxu1 %v1359_v42 }
 0x450   : > { %4575 = vmatpush3.bf16.msra.mxu0 %v1407_v44  ;;  %1593 = vrot.lane.b32.xlu1 %v5087_v50, %s4871_s25 }
 0x451   : > { %4570 = vmatprep.mubr.msk.bf16.mxu1 %vm4866_vm4, %v4865_v17  ;;  %4580 = vmatprep.subr.bf16.mxu1 %v4865_v17 }
 0x452   : > { %4576 = vmatprep.mubr.msk.bf16.mxu0 %vm4866_vm4, %v4865_v17  ;;  %4586 = vmatprep.subr.bf16.mxu0 %v4865_v17 }
 0x459   : > { %1545 = vrot.lane.b32.xlu0 %v5082_v49, %s4871_s25 }
 0x48f   : > { %v1216_v45 = vpop.xlane.xlu1 %1215 }
 0x490   : > { %4816 = vrcp.f32 %v1216_v45 }
 0x493   : > { %v1219_v47 = vpop.xlane.xlu0 %1218  ;;  %v1498_v56 = vpop.permute.xlu1 %1497 }
 0x494   : > { %4818 = vrcp.f32 %v1219_v47  ;;  %v1503_v57 = vsel %vm1261_vm7, %v1498_v56, 0 }
 0x497   : > { %v1450_v51 = vpop.permute.xlu0 %1449 }
 0x498   : > { %v1455_v54 = vsel %vm1261_vm7, %v1450_v51, 0 }
 0x49d   : > { %v4817_v48 = vpop.eup %4816 }
 0x49e   : > { %v1242_v50 = vmul.f32 %v4817_v48, %v5154_v5 }
 0x4a0   : > { %v1250_v52 = vpack.c.bf16 %v1242_v50, %v1242_v50 }
 0x4a1   : > { %v4819_v53 = vpop.eup %4818 }
 0x4a2   : > { %4571 = vmatmul.mubr.msk.bf16.vlgmr.msra.gmra.mxu1 %vm765_vm6, %v1250_v52  ;;  %v1243_v55 = vmul.f32 %v4819_v53, %v5158_v8 }
 0x4a3   : > { %4581 = vmatpush3.bf16.msra.mxu1 %v1455_v54  ;;  %4582 = vmatprep.mubr.msk.bf16.mxu1 %vm4866_vm4, %v4865_v17 }
 0x4a4   : > { %v1251_v49 = vpack.c.bf16 %v1243_v55, %v1243_v55  ;;  %4592 = vmatprep.subr.bf16.mxu1 %v4865_v17 }
 0x4a6   : > { %4577 = vmatmul.mubr.msk.bf16.vlgmr.msra.gmra.mxu0 %vm765_vm6, %v1251_v49 }
 0x4a7   : > { %4587 = vmatpush3.bf16.msra.mxu0 %v1503_v57  ;;  %4588 = vmatprep.mubr.msk.bf16.mxu0 %vm4866_vm4, %v4865_v17 }
 0x4a8   : > { %4598 = vmatprep.subr.bf16.mxu0 %v4865_v17 }
 0x4c4   : > { %v1222_v58 = vpop.xlane.xlu1 %1221 }
 0x4c5   : > { %4820 = vrcp.f32 %v1222_v58 }
 0x4c8   : > { %v1228_v59 = vpop.xlane.xlu1 %1227  ;;  %v1225_v60 = vpop.xlane.xlu0 %1224 }
 0x4c9   : > { %4822 = vrcp.f32 %v1228_v59 }
 0x4ca   : > { %4824 = vrcp.f32 %v1225_v60 }
 0x4cc   : > { %v1231_v61 = vpop.xlane.xlu0 %1230  ;;  %v1594_v3 = vpop.permute.xlu1 %1593 }
 0x4cd   : > { %4826 = vrcp.f32 %v1231_v61  ;;  %v1599_v7 = vsel %vm1261_vm7, %v1594_v3, 0  ;;  %v5241_v3 = vld [vmem:[%s4993_s28] sm:$0x3f] }
 0x4d0   : > { %v1546_v34 = vpop.permute.xlu0 %1545 }
 0x4d1   : > { %v1551_v30 = vsel %vm1261_vm7, %v1546_v34, 0 }
 0x4d2   : > { %v4821_v62 = vpop.eup %4820 }
 0x4d3   : > { %v1244_v63 = vmul.f32 %v4821_v62, %v5170_v46 }
 0x4d5   : > { %v1252_v39 = vpack.c.bf16 %v1244_v63, %v1244_v63 }
 0x4d6   : > { %v4823_v0 = vpop.eup %4822 }
 0x4d7   : > { %v4825_v1 = vpop.eup %4824  ;;  %4583 = vmatmul.mubr.msk.bf16.vlgmr.msra.gmra.mxu1 %vm765_vm6, %v1252_v39  ;;  %v1246_v4 = vmul.f32 %v4823_v0, %v5176_v26 }
 0x4d8   : > { %4593 = vmatpush3.bf16.msra.mxu1 %v1551_v30  ;;  %v1245_v2 = vmul.f32 %v4825_v1, %v5172_v43  ;;  %4594 = vmatprep.mubr.msk.bf16.mxu1 %vm4866_vm4, %v4865_v17  ;;  %v1679_v1 = vlaneseq }
 0x4d9   : > { %4604 = vmatprep.subr.bf16.mxu1 %v4865_v17  ;;  %v1254_v8 = vpack.c.bf16 %v1246_v4, %v1246_v4 }
 0x4da   : > { %v1253_v5 = vpack.c.bf16 %v1245_v2, %v1245_v2  ;;  %v4827_v6 = vpop.eup %4826  ;;  %v5235_v30 = vshrl.u32 %v1679_v1, 7 }
 0x4db   : > { %v1247_v9 = vmul.f32 %v4827_v6, %v5182_v32  ;;  %v4667_v32 = vld [vmem:[%s4986_s23] sm:$0xff]  }
 0x4dc   : > { %4589 = vmatmul.mubr.msk.bf16.vlgmr.msra.gmra.mxu0 %vm765_vm6, %v1253_v5  ;;  %v5238_v2 = vsub.s32 0, %v5235_v30 }
 0x4dd   : > { %4599 = vmatpush3.bf16.msra.mxu0 %v1599_v7  ;;  %4600 = vmatprep.mubr.msk.bf16.mxu0 %vm4866_vm4, %v4865_v17  ;;  %v1255_v10 = vpack.c.bf16 %v1247_v9, %v1247_v9 }
 0x4de   : > { %v1682_v4 = vrot.slane %v5241_v3, %v5238_v2 }
 0x4df   : > { %4595 = vmatmul.mubr.msk.bf16.vlgmr.msra.gmra.mxu1 %vm765_vm6, %v1254_v8  ;;  %v4836_v8 = vld [vmem:[#allocation2] sm:$0xff] }
 0x4e0   : > { %4608 = vmatprep.mubr.msk.bf16.mxu1 %vm4866_vm4, %v4865_v17  ;;  %4605 = vmatpush3.bf16.msra.mxu1 %v4666_v27  ;;  %v1787_v27 = vld [vmem:[%s4998_s16 + $0xc0] sm:$0xff] }
 0x4e1   : > { %4606 = vmatprep.subr.bf16.mxu1 %v4865_v17 }
 0x4e4   : > { %4601 = vmatmul.mubr.msk.bf16.vlgmr.msra.gmra.mxu0 %vm765_vm6, %v1255_v10  ;;  %4607 = vmatpush3.bf16.msra.mxu1 %v4667_v32 }
 0x50e   : > { %v1299_v11 = vpop.f32.mrf.mxu1 }
 0x50f   : > { %v1347_v12 = vpop.f32.mrf.mxu0 }
 0x510   : > { %v4560_v13 = vpop.f32.mrf.mxu1 }
 0x511   : > { %v4566_v14 = vpop.f32.mrf.mxu0 }
 0x512   : > { %v1302_v15 = vpop.f32.mrf.mxu1  ;;  %v4837_v14 = vld [vmem:[#allocation2 + $0x8] sm:$0xff] }
 0x513   : > { %v1350_v16 = vpop.f32.mrf.mxu0 }
 0x514   : > { %v4561_v18 = vpop.f32.mrf.mxu1 }
 0x515   : > { %v4567_v19 = vpop.f32.mrf.mxu0 }
 0x562   : > { %v1395_v20 = vpop.f32.mrf.mxu1 }
 0x564   : > { %v4572_v21 = vpop.f32.mrf.mxu1 }
 0x566   : > { %v1398_v22 = vpop.f32.mrf.mxu1  ;;  %v1443_v23 = vpop.f32.mrf.mxu0 }
 0x567   : > { %v4649_v46 = vpack.i.bf16 %v1443_v23, %v1395_v20 }
 0x568   : > { %v4573_v24 = vpop.f32.mrf.mxu1  ;;  %v4578_v43 = vpop.f32.mrf.mxu0 }
 0x569   : > { %4650 = vrot.lane.b32.xlu0 %v4649_v46, %s4872_s4 }
 0x56a   : > { %v1446_v25 = vpop.f32.mrf.mxu0 }
 0x56c   : > { %v4579_v26 = vpop.f32.mrf.mxu0 }
 0x56d   : > { %v1785_v26 = vld [vmem:[%s4998_s16 + $0x80] sm:$0xff] }
 0x56e   : > { %v4100_v32 = vcombine.low %v1785_v26, %v1787_v27 }
 0x597   : > { %v1491_v28 = vpop.f32.mrf.mxu1 }
 0x599   : > { %v4584_v29 = vpop.f32.mrf.mxu1 }
 0x59a   : > { %v4101_v29 = vcombine.high %v1785_v26, %v1787_v27  ;;  %v4678_v26 = vld [vmem:[%s5009_s6 + $0x128] sm:$0xff]  }
 0x59b   : > { %v1494_v31 = vpop.f32.mrf.mxu1  ;;  %v4679_v27 = vld [vmem:[%s5009_s6 + $0x1a8] sm:$0xff]  }
 0x59c   : > { %v1539_v33 = vpop.f32.mrf.mxu0  ;;  %v1788_v31 = vld [vmem:[%s4998_s16 + $0xc8] sm:$0xff]  ;;  %1866 = vmatprep.subr.bf16.mxu0 %v4101_v29  ;;  %v4681_v29 = vld [vmem:[%s5009_s6 + $0x1e0] sm:$0xff]  }
 0x59d   : > { %v4654_v35 = vpack.i.bf16 %v1539_v33, %v1491_v28  ;;  %v4585_v36 = vpop.f32.mrf.mxu1  ;;  %v1786_v28 = vld [vmem:[%s4998_s16 + $0x88] sm:$0xff]  ;;  %1867 = vmatpush1.bf16.msra.mxu0 %v4100_v32  ;;  %v4683_v32 = vld [vmem:[%s5009_s6 + $0x1a0] sm:$0xff]  }
 0x59e   : > { %v4590_v37 = vpop.f32.mrf.mxu0  ;;  %v4102_v33 = vcombine.low %v1786_v28, %v1788_v31  ;;  %v1781_v36 = vld [vmem:[%s4998_s16] sm:$0xff] }
 0x59f   : > { %4655 = vrot.lane.b32.xlu1 %v4654_v35, %s4873_s14  ;;  %v1587_v38 = vpop.f32.mrf.mxu1  ;;  %v4103_v35 = vcombine.high %v1786_v28, %v1788_v31  ;;  %v1783_v37 = vld [vmem:[%s4998_s16 + $0x40] sm:$0xff] }
 0x5a0   : > { %v1542_v40 = vpop.f32.mrf.mxu0  ;;  %v4680_v28 = vld [vmem:[%s5009_s6 + $0x160] sm:$0xff]  }
 0x5a1   : > { %v4596_v41 = vpop.f32.mrf.mxu1  ;;  %1909 = vmatprep.subr.bf16.mxu1 %v4103_v35  ;;  %v4097_v40 = vcombine.high %v1781_v36, %v1783_v37  ;;  %v4682_v31 = vld [vmem:[%s5009_s6 + $0x120] sm:$0xff]   ;;  %v4685_v35 = vld [vmem:[%s5009_s6 + $0x1d8] sm:$0xff]  }
 0x5a2   : > { %v4591_v42 = vpop.f32.mrf.mxu0  ;;  %v1784_v41 = vld [vmem:[%s4998_s16 + $0x48] sm:$0xff] }
 0x5a3   : > { %v1590_v44 = vpop.f32.mrf.mxu1  ;;  %v4096_v42 = vcombine.low %v1781_v36, %v1783_v37  ;;  %1868 = vmatprep.subr.bf16.mxu0 %v4097_v40  ;;  %v4686_v36 = vld [vmem:[%s5009_s6 + $0x118] sm:$0xff]   ;;  %v4689_v40 = vld [vmem:[%s5009_s6 + $0x1d0] sm:$0xff]  }
 0x5a4   : > { %v1635_v45 = vpop.f32.mrf.mxu0  ;;  %v4687_v37 = vld [vmem:[%s5009_s6 + $0x198] sm:$0xff]  }
 0x5a5   : > { %v4659_v47 = vpack.i.bf16 %v1635_v45, %v1587_v38  ;;  %v4597_v48 = vpop.f32.mrf.mxu1  ;;  %v1782_v38 = vld [vmem:[%s4998_s16 + $0x8] sm:$0xff]  ;;  %1869 = vmatpush1.bf16.msra.mxu0 %v4096_v42  ;;  %v4691_v42 = vld [vmem:[%s5009_s6 + $0x190] sm:$0xff]  }
 0x5a6   : > { %v4602_v50 = vpop.f32.mrf.mxu0  ;;  %v4098_v44 = vcombine.low %v1782_v38, %v1784_v41  ;;  %v4099_v45 = vcombine.high %v1782_v38, %v1784_v41  ;;  %v2022_v48 = vld [vmem:[%s4998_s16 + $0xd0] sm:$0xff] }
 0x5a7   : > { %4660 = vrot.lane.b32.xlu0 %v4659_v47, %s4874_s26  ;;  %v2020_v47 = vld [vmem:[%s4998_s16 + $0x90] sm:$0xff]  ;;  %v2021_v50 = vld [vmem:[%s4998_s16 + $0x98] sm:$0xff] }
 0x5a8   : > { %v1638_v17 = vpop.f32.mrf.mxu0  ;;  %v4688_v38 = vld [vmem:[%s5009_s6 + $0x150] sm:$0xff]  }
 0x5a9   : > { %v4875_v17 = vmov 0   ;;  %v4690_v41 = vld [vmem:[%s5009_s6 + $0x110] sm:$0xff]  }
 0x5aa   : > { %v4603_v51 = vpop.f32.mrf.mxu0  ;;  %1886 = vmatprep.mubr.bf16.mxu0 %v4875_v17 }
 0x5ab   : > { %v4111_v51 = vcombine.high %v2020_v47, %v2022_v48 }
 0x5ad   : > { %2098 = vmatprep.subr.bf16.mxu0 %v4111_v51  ;;  %v4697_v51 = vld [vmem:[%s5009_s6 + $0x1c0] sm:$0xff]  }
 0x5db   : > { %v4651_v52 = vpop.permute.xlu0 %4650 }
 0x5dc   : > { %v4653_v54 = vunpack.i.h.bf16 %v4651_v52  ;;  %v4652_v55 = vunpack.i.l.bf16 %v4651_v52  ;;  %v2023_v52 = vld [vmem:[%s4998_s16 + $0xd8] sm:$0xff] }
 0x5de   : > { %v1666_v58 = vsel %vm765_vm6, %v1347_v12, %v4653_v54  ;;  %v1665_v59 = vsel %vm765_vm6, %v1299_v11, %v4652_v55  ;;  %v4112_v54 = vcombine.low %v2021_v50, %v2023_v52  ;;  %v4113_v55 = vcombine.high %v2021_v50, %v2023_v52  ;;  %v4696_v50 = vld [vmem:[%s5009_s6 + $0x140] sm:$0xff]  }
 0x5df   : > { %v4698_v52 = vld [vmem:[%s5009_s6 + $0x100] sm:$0xff]  }
 0x611   : > { %v4656_v53 = vpop.permute.xlu1 %4655 }
 0x612   : > { %v4658_v56 = vunpack.i.h.bf16 %v4656_v53  ;;  %v4657_v49 = vunpack.i.l.bf16 %v4656_v53  ;;  %v4110_v53 = vcombine.low %v2020_v47, %v2022_v48  ;;  %v4694_v47 = vld [vmem:[%s5009_s6 + $0x108] sm:$0xff]  }
 0x613   : > { %v4695_v48 = vld [vmem:[%s5009_s6 + $0x188] sm:$0xff]  }
 0x614   : > { %v1669_v62 = vsel %vm1667_vm8, %v1666_v58, %v4658_v56  ;;  %v1668_v63 = vsel %vm1667_vm8, %v1665_v59, %v4657_v49 }
 0x619   : > { %v4661_v57 = vpop.permute.xlu0 %4660 }
 0x61a   : > { %v4663_v60 = vunpack.i.h.bf16 %v4661_v57  ;;  %v4662_v61 = vunpack.i.l.bf16 %v4661_v57 }
 0x61c   : > { %v1672_v34 = vsel %vm1670_vm9, %v1669_v62, %v4663_v60  ;;  %v1671_v39 = vsel %vm1670_vm9, %v1668_v63, %v4662_v61  ;;  %v5264_v61 = vsub.s32 1, %v5235_v30  ;;  %v5267_v63 = vsub.s32 2, %v5235_v30 }
 0x61d   : > { %v1674_v0 = vpack.c.bf16 %v1672_v34, %v1671_v39 }
 0x61e   : > { %v1771_v34 = vrot.slane %v5241_v3, %v5264_v61  ;;  %v1777_v1 = vrot.slane %v5241_v3, %v5267_v63 }
 0x61f   : > { %4609 = vmatmul.mubr.msk.bf16.vlgmr.msra.gmra.mxu1 %vm680_vm5, %v1674_v0 }
 0x620   : > { %1910 = vmatpush1.bf16.msra.mxu1 %v4102_v33  ;;  %1929 = vmatprep.mubr.bf16.mxu1 %v4875_v17  ;;  %v4684_v33 = vld [vmem:[%s5009_s6 + $0x158] sm:$0xff]  }
 0x621   : > { %1911 = vmatprep.subr.bf16.mxu1 %v4099_v45  ;;  %v4693_v45 = vld [vmem:[%s5009_s6 + $0x1c8] sm:$0xff]  }
 0x624   : > { %1912 = vmatpush1.bf16.msra.mxu1 %v4098_v44  ;;  %v4692_v44 = vld [vmem:[%s5009_s6 + $0x148] sm:$0xff]  }
 0x625   : > { %2141 = vmatprep.subr.bf16.mxu1 %v4113_v55  ;;  %v4701_v55 = vld [vmem:[%s5009_s6 + $0xf8] sm:$0xff]  }
 0x6df   : > { %v1732_v5 = vpop.f32.mrf.mxu1 }
 0x6e0   : > { %v1733_v6 = vadd.f32 %v1732_v5, %v1682_v4 }
 0x6e1   : > { %v4610_v7 = vpop.f32.mrf.mxu1 }
 0x6e2   : > { %v1739_v9 = vadd.f32 %v4836_v8, %v1733_v6  ;;  %v2016_v7 = vld [vmem:[%s4998_s16 + $0x10] sm:$0xff] }
 0x6e3   : > { %v1735_v10 = vpop.f32.mrf.mxu1  ;;  %v2018_v8 = vld [vmem:[%s4998_s16 + $0x50] sm:$0xff] }
 0x6e4   : > { %v1736_v11 = vadd.f32 %v1735_v10, %v1682_v4  ;;  %v1741_v12 = vsel %vm680_vm5, %v1739_v9, 0.0  ;;  %v2019_v10 = vld [vmem:[%s4998_s16 + $0x58] sm:$0xff] }
 0x6e5   : > { %1742 = vadd.xlane.f32.xlu1 %v1741_v12  ;;  %v4611_v13 = vpop.f32.mrf.mxu1 }
 0x6e6   : > { %v1740_v15 = vadd.f32 %v4837_v14, %v1736_v11  ;;  %v4107_v14 = vcombine.high %v2016_v7, %v2018_v8 }
 0x6e8   : > { %v1744_v16 = vsel %vm680_vm5, %v1740_v15, 0.0 }
 0x6e9   : > { %1745 = vadd.xlane.f32.xlu0 %v1744_v16 }
 0x76e   : > { %v1743_v18 = vpop.xlane.xlu1 %1742 }
 0x76f   : > { %v1748_v19 = vmul.f32 0.03125, %v1743_v18  ;;  %v4668_v18 = vld [vmem:[%s5009_s6 + $0x178] sm:$0xff]  }
 0x771   : > { %v1750_v20 = vsub.f32 %v1739_v9, %v1748_v19  ;;  %v2017_v9 = vld [vmem:[%s4998_s16 + $0x18] sm:$0xff] }
 0x772   : > { %v1746_v21 = vpop.xlane.xlu0 %1745  ;;  %v4109_v3 = vcombine.high %v2017_v9, %v2019_v10  ;;  %v4108_v16 = vcombine.low %v2017_v9, %v2019_v10  ;;  %v4669_v19 = vld [vmem:[%s5009_s6 + $0x1f8] sm:$0xff]  }
 0x773   : > { %v1749_v22 = vmul.f32 0.03125, %v1746_v21  ;;  %v1752_v23 = vmul.f32 %v1750_v20, %v1750_v20  ;;  %v4671_v21 = vld [vmem:[%s5009_s6 + $0x1b8] sm:$0xff]  }
 0x775   : > { %v1751_v46 = vsub.f32 %v1740_v15, %v1749_v22  ;;  %v1754_v24 = vsel %vm680_vm5, %v1752_v23, 0.0  ;;  %v4106_v15 = vcombine.low %v2016_v7, %v2018_v8  ;;  %v4672_v22 = vld [vmem:[%s5009_s6 + $0x170] sm:$0xff]  }
 0x776   : > { %1755 = vadd.xlane.f32.xlu0 %v1754_v24  ;;  %v4673_v23 = vld [vmem:[%s5009_s6 + $0x1f0] sm:$0xff]  }
 0x777   : > { %v1753_v43 = vmul.f32 %v1751_v46, %v1751_v46  ;;  %v4675_v24 = vld [vmem:[%s5009_s6 + $0x1b0] sm:$0xff]  }
 0x779   : > { %v1757_v25 = vsel %vm680_vm5, %v1753_v43, 0.0  ;;  %v4676_v43 = vld [vmem:[%s5009_s6 + $0x168] sm:$0xff]  }
 0x77a   : > { %1758 = vadd.xlane.f32.xlu1 %v1757_v25  ;;  %v4677_v25 = vld [vmem:[%s5009_s6 + $0x1e8] sm:$0xff]  }
 0x7ff   : > { %v1756_v56 = vpop.xlane.xlu0 %1755 }
 0x800   : > { %v1760_v49 = vmul.f32 0.03125, %v1756_v56 }
 0x802   : > { %v1762_v57 = vadd.f32 1e-05, %v1760_v49 }
 0x803   : > { %v1759_v58 = vpop.xlane.xlu1 %1758 }
 0x804   : > { %4828 = vrsqrt.f32 %v1762_v57  ;;  %v1761_v59 = vmul.f32 0.03125, %v1759_v58 }
 0x806   : > { %v1763_v60 = vadd.f32 1e-05, %v1761_v59 }
 0x808   : > { %4830 = vrsqrt.f32 %v1763_v60 }
 0x811   : > { %v4829_v62 = vpop.eup %4828 }
 0x812   : > { %v1766_v39 = vmul.f32 %v4829_v62, %v1750_v20  ;;  %v4670_v20 = vld [vmem:[%s5009_s6 + $0x138] sm:$0xff]  }
 0x814   : > { %v1772_v4 = vmul.f32 %v1771_v34, %v1766_v39  ;;  %v5338_v39 = vsub.s32 3, %v5235_v30 }
 0x815   : > { %v4831_v0 = vpop.eup %4830 }
 0x816   : > { %v1767_v5 = vmul.f32 %v4831_v0, %v1751_v46  ;;  %v5277_v11 = vadd.f32 %v1777_v1, %v1772_v4  ;;  %v4674_v46 = vld [vmem:[%s5009_s6 + $0x130] sm:$0xff]   ;;  %v2024_v0 = vld [vmem:[%s5003_s17 + $0x4] sm:$0xf] }
 0x817   : > { %v2029_v7 = vrot.slane %v2024_v0, %v5238_v2  ;;  %v2037_v8 = vrot.slane %v2024_v0, %v5267_v63 }
 0x818   : > { %v1773_v6 = vmul.f32 %v1771_v34, %v1767_v5  ;;  %v2033_v5 = vrot.slane %v2024_v0, %v5264_v61 }
 0x81a   : > { %v5279_v12 = vadd.f32 %v1777_v1, %v1773_v6  ;;  %v2041_v6 = vrot.slane %v2024_v0, %v5338_v39  ;;  %v4707_v0 = vld [vmem:[%s5009_s6 + $0xb0] sm:$0xff]  }
 0x81c   : > { %v5283_v13 = vpack.c.bf16 %v5279_v12, %v5277_v11 }
 0x81e   : > { %4104 = vmatmul.mubr.msk.bf16.vlgmr.msra.gmra.mxu0 %vm680_vm5, %v5283_v13  ;;  %4105 = vmatmul.mubr.msk.bf16.vlgmr.msra.gmra.mxu1 %vm680_vm5, %v5283_v13 }
 0x81f   : > { %2099 = vmatpush1.bf16.msra.mxu0 %v4110_v53  ;;  %2142 = vmatpush1.bf16.msra.mxu1 %v4112_v54  ;;  %v4699_v53 = vld [vmem:[%s5009_s6 + $0x180] sm:$0xff]   ;;  %v4700_v54 = vld [vmem:[%s5009_s6 + $0x78] sm:$0xff]  }
 0x820   : > { %2100 = vmatprep.subr.bf16.mxu0 %v4107_v14  ;;  %2143 = vmatprep.subr.bf16.mxu1 %v4109_v3  ;;  %v5346_v14 = vld [vmem:[%s5003_s17] sm:$0xf] }
 0x821   : > { %2118 = vmatprep.mubr.bf16.mxu0 %v4875_v17  ;;  %2161 = vmatprep.mubr.bf16.mxu1 %v4875_v17  ;;  %v1798_v3 = vrot.slane %v5346_v14, %v5264_v61 }
 0x823   : > { %2101 = vmatpush1.bf16.msra.mxu0 %v4106_v15  ;;  %2144 = vmatpush1.bf16.msra.mxu1 %v4108_v16  ;;  %v1806_v15 = vrot.slane %v5346_v14, %v5338_v39 }
 0x824   : > { %4318 = vmatprep.subr.bf16.mxu0 %v4668_v18  ;;  %4340 = vmatprep.subr.bf16.mxu1 %v4669_v19 }
 0x826   : > { %4114 = vmatmul.mubr.msk.bf16.vlgmr.msra.gmra.mxu0 %vm680_vm5, %v5283_v13  ;;  %4115 = vmatmul.mubr.msk.bf16.vlgmr.msra.gmra.mxu1 %vm680_vm5, %v5283_v13 }
 0x827   : > { %4319 = vmatpush3.bf16.msra.mxu0 %v4670_v20  ;;  %4341 = vmatpush3.bf16.msra.mxu1 %v4671_v21 }
 0x828   : > { %4320 = vmatprep.subr.bf16.mxu0 %v4672_v22  ;;  %4342 = vmatprep.subr.bf16.mxu1 %v4673_v23 }
 0x82b   : > { %4321 = vmatpush3.bf16.msra.mxu0 %v4674_v46  ;;  %4343 = vmatpush3.bf16.msra.mxu1 %v4675_v24 }
 0x82c   : > { %4322 = vmatprep.subr.bf16.mxu0 %v4676_v43  ;;  %4344 = vmatprep.subr.bf16.mxu1 %v4677_v25 }
 0x82f   : > { %4323 = vmatpush3.bf16.msra.mxu0 %v4678_v26  ;;  %4345 = vmatpush3.bf16.msra.mxu1 %v4679_v27 }
 0x830   : > { %4324 = vmatprep.subr.bf16.mxu0 %v4680_v28  ;;  %4346 = vmatprep.subr.bf16.mxu1 %v4681_v29 }
 0x833   : > { %4325 = vmatpush3.bf16.msra.mxu0 %v4682_v31  ;;  %4347 = vmatpush3.bf16.msra.mxu1 %v4683_v32 }
 0x834   : > { %4326 = vmatprep.subr.bf16.mxu0 %v4684_v33  ;;  %4348 = vmatprep.subr.bf16.mxu1 %v4685_v35 }
 0x837   : > { %4327 = vmatpush3.bf16.msra.mxu0 %v4686_v36  ;;  %4349 = vmatpush3.bf16.msra.mxu1 %v4687_v37 }
 0x838   : > { %4328 = vmatprep.subr.bf16.mxu0 %v4688_v38  ;;  %4350 = vmatprep.subr.bf16.mxu1 %v4689_v40 }
 0x83b   : > { %4329 = vmatpush3.bf16.msra.mxu0 %v4690_v41  ;;  %4351 = vmatpush3.bf16.msra.mxu1 %v4691_v42 }
 0x83c   : > { %4330 = vmatprep.subr.bf16.mxu0 %v4692_v44  ;;  %4352 = vmatprep.subr.bf16.mxu1 %v4693_v45 }
 0x83f   : > { %4331 = vmatpush3.bf16.msra.mxu0 %v4694_v47  ;;  %4353 = vmatpush3.bf16.msra.mxu1 %v4695_v48  ;;  %v4702_v48 = vld [vmem:[%s5009_s6 + $0x38] sm:$0xff]  }
 0x840   : > { %4332 = vmatprep.subr.bf16.mxu0 %v4696_v50  ;;  %4354 = vmatprep.subr.bf16.mxu1 %v4697_v51  ;;  %v4703_v50 = vld [vmem:[%s5009_s6 + $0xb8] sm:$0xff]  }
 0x843   : > { %4333 = vmatpush3.bf16.msra.mxu0 %v4698_v52  ;;  %4355 = vmatpush3.bf16.msra.mxu1 %v4699_v53 }
 0x844   : > { %4362 = vmatprep.subr.bf16.mxu0 %v4700_v54  ;;  %4384 = vmatprep.subr.bf16.mxu1 %v4701_v55  ;;  %v4704_v55 = vld [vmem:[%s5009_s6 + $0x70] sm:$0xff]  }
 0x8de   : > { %v5329_v56 = vpop.f32.mrf.mxu0  ;;  %v5331_v49 = vpop.f32.mrf.mxu1 }
 0x8e0   : > { %v1890_v57 = vpop.f32.mrf.mxu0  ;;  %v1933_v58 = vpop.f32.mrf.mxu1 }
 0x8e1   : > { %v1891_v29 = vadd.f32 %v1890_v57, %v1798_v3  ;;  %v1934_v31 = vadd.f32 %v1933_v58, %v1806_v15  ;;  %v4705_v57 = vld [vmem:[%s5009_s6 + $0xf0] sm:$0xff]  }
 0x8e2   : > { %v5333_v59 = vpop.f32.mrf.mxu0  ;;  %v5335_v60 = vpop.f32.mrf.mxu1 }
 0x8e3   : > { %v1941_v51 = vmax.f32 %v1891_v29, 0.0  ;;  %v1943_v52 = vmax.f32 %v1934_v31, 0.0  ;;  %v4728_v29 = vld [vmem:[%s5009_s6 + $0x40] sm:$0xff]  }
 0x8e4   : > { %v1894_v62 = vpop.f32.mrf.mxu0  ;;  %v1937_v34 = vpop.f32.mrf.mxu1  ;;  %v4729_v31 = vld [vmem:[%s5009_s6 + $0xc0] sm:$0xff]  }
 0x8e5   : > { %v1895_v23 = vadd.f32 %v1894_v62, %v1798_v3  ;;  %v1938_v46 = vadd.f32 %v1937_v34, %v1806_v15  ;;  %v4706_v34 = vld [vmem:[%s5009_s6 + $0x30] sm:$0xff]   ;;  %v4716_v3 = vld [vmem:[%s5009_s6 + $0x58] sm:$0xff]  }
 0x8e6   : > { %v2120_v1 = vpop.f32.mrf.mxu0  ;;  %v2163_v4 = vpop.f32.mrf.mxu1  ;;  %v4717_v15 = vld [vmem:[%s5009_s6 + $0xd8] sm:$0xff]  }
 0x8e7   : > { %v2121_v24 = vadd.f32 %v2120_v1, %v2029_v7  ;;  %v2164_v43 = vadd.f32 %v2163_v4, %v2037_v8  ;;  %v1945_v40 = vmax.f32 %v1895_v23, 0.0  ;;  %v1947_v41 = vmax.f32 %v1938_v46, 0.0  ;;  %v4708_v1 = vld [vmem:[%s5009_s6 + $0x68] sm:$0xff]  }
 0x8e8   : > { %v2122_v9 = vpop.f32.mrf.mxu0  ;;  %v2165_v10 = vpop.f32.mrf.mxu1  ;;  %v4709_v4 = vld [vmem:[%s5009_s6 + $0xe8] sm:$0xff]  }
 0x8e9   : > { %v2123_v19 = vadd.f32 %v2122_v9, %v2033_v5  ;;  %v2166_v20 = vadd.f32 %v2165_v10, %v2041_v6  ;;  %v2172_v42 = vmax.f32 %v2121_v24, 0.0  ;;  %v2174_v44 = vmax.f32 %v2164_v43, 0.0  ;;  %v4714_v9 = vld [vmem:[%s5009_s6 + $0x20] sm:$0xff]   ;;  %v4724_v23 = vld [vmem:[%s5009_s6 + $0x48] sm:$0xff]  }
 0x8ea   : > { %v2124_v16 = vpop.f32.mrf.mxu0  ;;  %v2167_v18 = vpop.f32.mrf.mxu1  ;;  %v1949_v58 = vpack.c.bf16 %v1945_v40, %v1941_v51  ;;  %v1951_v62 = vpack.c.bf16 %v1947_v41, %v1943_v52  ;;  %v4715_v10 = vld [vmem:[%s5009_s6 + $0xa0] sm:$0xff]   ;;  %v4725_v46 = vld [vmem:[%s5009_s6 + $0xc8] sm:$0xff]   ;;  %v1794_v24 = vrot.slane %v5346_v14, %v5238_v2  ;;  %v1802_v43 = vrot.slane %v5346_v14, %v5267_v63 }
 0x8eb   : > { %v2125_v21 = vadd.f32 %v2124_v16, %v2029_v7  ;;  %v2168_v22 = vadd.f32 %v2167_v18, %v2037_v8  ;;  %v2173_v35 = vmax.f32 %v2123_v19, 0.0  ;;  %v2175_v36 = vmax.f32 %v2166_v20, 0.0  ;;  %v4712_v7 = vld [vmem:[%s5009_s6 + $0x60] sm:$0xff]   ;;  %v4718_v16 = vld [vmem:[%s5009_s6 + $0x18] sm:$0xff]   ;;  %v4720_v19 = vld [vmem:[%s5009_s6 + $0x50] sm:$0xff]  }
 0x8ec   : > { %v2126_v25 = vpop.f32.mrf.mxu0  ;;  %v2169_v26 = vpop.f32.mrf.mxu1  ;;  %v4713_v8 = vld [vmem:[%s5009_s6 + $0xe0] sm:$0xff]   ;;  %v4719_v18 = vld [vmem:[%s5009_s6 + $0x98] sm:$0xff]   ;;  %v4721_v20 = vld [vmem:[%s5009_s6 + $0xd0] sm:$0xff]  }
 0x8ed   : > { %v2127_v27 = vadd.f32 %v2126_v25, %v2033_v5  ;;  %v2170_v28 = vadd.f32 %v2169_v26, %v2041_v6  ;;  %v2176_v32 = vmax.f32 %v2125_v21, 0.0  ;;  %v2178_v33 = vmax.f32 %v2168_v22, 0.0  ;;  %v4710_v5 = vld [vmem:[%s5009_s6 + $0x28] sm:$0xff]   ;;  %v4722_v21 = vld [vmem:[%s5009_s6 + $0x10] sm:$0xff]  }
 0x8ee   : > { %v4711_v6 = vld [vmem:[%s5009_s6 + $0xa8] sm:$0xff]   ;;  %v4723_v22 = vld [vmem:[%s5009_s6 + $0x90] sm:$0xff]  }
 0x8ef   : > { %v2177_v37 = vmax.f32 %v2127_v27, 0.0  ;;  %v2179_v38 = vmax.f32 %v2170_v28, 0.0  ;;  %v2180_v53 = vpack.c.bf16 %v2176_v32, %v2172_v42  ;;  %v2182_v54 = vpack.c.bf16 %v2178_v33, %v2174_v44  ;;  %v4726_v25 = vld [vmem:[%s5009_s6 + $0x8] sm:$0xff]   ;;  %v2800_v32 = vld [vmem:[%s4998_s16 + $0xa0] sm:$0xff] }
 0x8f0   : > { %v4727_v26 = vld [vmem:[%s5009_s6 + $0x88] sm:$0xff]   ;;  %v1893_v27 = vadd.f32 %v5333_v59, %v1794_v24  ;;  %v1936_v28 = vadd.f32 %v5335_v60, %v1802_v43  ;;  %v2802_v33 = vld [vmem:[%s4998_s16 + $0xe0] sm:$0xff] }
 0x8f1   : > { %v2181_v45 = vpack.c.bf16 %v2177_v37, %v2173_v35  ;;  %v2183_v47 = vpack.c.bf16 %v2179_v38, %v2175_v36  ;;  %v2801_v35 = vld [vmem:[%s4998_s16 + $0xa8] sm:$0xff]  ;;  %v1889_v36 = vadd.f32 %v5329_v56, %v1794_v24  ;;  %v1932_v37 = vadd.f32 %v5331_v49, %v1802_v43  ;;  %v4730_v59 = vld [vmem:[%s5009_s6] sm:$0xff]   ;;  %v4753_v24 = vld [vmem:[%s5009_s6 + $0x2d0] sm:$0xff]  }
 0x8f2   : > { %v2803_v14 = vld [vmem:[%s4998_s16 + $0xe8] sm:$0xff]  ;;  %v4731_v60 = vld [vmem:[%s5009_s6 + $0x80] sm:$0xff]   ;;  %v1944_v38 = vmax.f32 %v1893_v27, 0.0  ;;  %v1946_v40 = vmax.f32 %v1936_v28, 0.0  ;;  %v4185_v41 = vcombine.high %v2800_v32, %v2802_v33  ;;  %v4184_v56 = vcombine.low %v2800_v32, %v2802_v33  ;;  %v4754_v43 = vld [vmem:[%s5009_s6 + $0x210] sm:$0xff]  }
 0x8f3   : > { %2472 = vmatprep.mubr.bf16.mxu0 %v2181_v45  ;;  %2513 = vmatprep.mubr.bf16.mxu1 %v2183_v47  ;;  %v4187_v42 = vcombine.high %v2801_v35, %v2803_v14  ;;  %v2796_v44 = vld [vmem:[%s4998_s16 + $0x20] sm:$0xff]  ;;  %v2797_v47 = vld [vmem:[%s4998_s16 + $0x28] sm:$0xff]  ;;  %v1942_v51 = vmax.f32 %v1932_v37, 0.0  ;;  %v4186_v49 = vcombine.low %v2801_v35, %v2803_v14  ;;  %v5437_v14 = vld [vmem:[%s4998_s16 + $0xb0] sm:$0xff] }
 0x8f4   : > { %2473 = vmatmul.mubr.bf16.vlgmr.msra.gmra.mxu0 %v2180_v53  ;;  %2514 = vmatmul.mubr.bf16.vlgmr.msra.gmra.mxu1 %v2182_v54  ;;  %v2798_v45 = vld [vmem:[%s4998_s16 + $0x60] sm:$0xff]  ;;  %v4757_v27 = vld [vmem:[%s5009_s6 + $0x2c8] sm:$0xff]   ;;  %v5443_v37 = vld [vmem:[%s4998_s16 + $0xb8] sm:$0xff] }
 0x8f5   : > { %4363 = vmatpush3.bf16.msra.mxu0 %v4702_v48  ;;  %4385 = vmatpush3.bf16.msra.mxu1 %v4703_v50  ;;  %v2799_v48 = vld [vmem:[%s4998_s16 + $0x68] sm:$0xff]  ;;  %v1940_v50 = vmax.f32 %v1889_v36, 0.0  ;;  %v4181_v52 = vcombine.high %v2796_v44, %v2798_v45  ;;  %v1950_v54 = vpack.c.bf16 %v1946_v40, %v1942_v51  ;;  %v4761_v32 = vld [vmem:[%s5009_s6 + $0x2c0] sm:$0xff]   ;;  %v5440_v36 = vld [vmem:[%s4998_s16 + $0xf0] sm:$0xff] }
 0x8f6   : > { %2746 = vmatprep.mubr.bf16.mxu0 %v1949_v58  ;;  %2787 = vmatprep.mubr.bf16.mxu1 %v1951_v62  ;;  %v4182_v58 = vcombine.low %v2797_v47, %v2799_v48  ;;  %v4732_v62 = vld [vmem:[%s5009_s6 + $0x278] sm:$0xff]   ;;  %v4758_v28 = vld [vmem:[%s5009_s6 + $0x208] sm:$0xff]   ;;  %v4762_v33 = vld [vmem:[%s5009_s6 + $0x200] sm:$0xff]  }
 0x8f7   : > { %4364 = vmatprep.subr.bf16.mxu0 %v4704_v55  ;;  %4386 = vmatprep.subr.bf16.mxu1 %v4705_v57  ;;  %v1948_v53 = vpack.c.bf16 %v1944_v38, %v1940_v50  ;;  %v4183_v55 = vcombine.high %v2797_v47, %v2799_v48  ;;  %v4180_v57 = vcombine.low %v2796_v44, %v2798_v45  ;;  %v4763_v35 = vld [vmem:[%s5009_s6 + $0x280] sm:$0xff]  }
 0x8f8   : > { %v4226_v38 = vcombine.low %v5437_v14, %v5440_v36 }
 0x8f9   : > { %4365 = vmatpush3.bf16.msra.mxu0 %v4706_v34  ;;  %4387 = vmatpush3.bf16.msra.mxu1 %v4707_v0  ;;  %v4733_v34 = vld [vmem:[%s5009_s6 + $0x2f8] sm:$0xff]  }
 0x8fa   : > { %4366 = vmatprep.subr.bf16.mxu0 %v4708_v1  ;;  %4388 = vmatprep.subr.bf16.mxu1 %v4709_v4  ;;  %v4734_v0 = vld [vmem:[%s5009_s6 + $0x238] sm:$0xff]   ;;  %v4736_v4 = vld [vmem:[%s5009_s6 + $0x270] sm:$0xff]  }
 0x8fb   : > { %v4735_v1 = vld [vmem:[%s5009_s6 + $0x2b8] sm:$0xff]  }
 0x8fd   : > { %4367 = vmatpush3.bf16.msra.mxu0 %v4710_v5  ;;  %4389 = vmatpush3.bf16.msra.mxu1 %v4711_v6  ;;  %v4737_v5 = vld [vmem:[%s5009_s6 + $0x2f0] sm:$0xff]  }
 0x8fe   : > { %4368 = vmatprep.subr.bf16.mxu0 %v4712_v7  ;;  %4390 = vmatprep.subr.bf16.mxu1 %v4713_v8  ;;  %v4738_v6 = vld [vmem:[%s5009_s6 + $0x230] sm:$0xff]   ;;  %v4740_v8 = vld [vmem:[%s5009_s6 + $0x268] sm:$0xff]  }
 0x8ff   : > { %v4739_v7 = vld [vmem:[%s5009_s6 + $0x2b0] sm:$0xff]  }
 0x901   : > { %4369 = vmatpush3.bf16.msra.mxu0 %v4714_v9  ;;  %4391 = vmatpush3.bf16.msra.mxu1 %v4715_v10  ;;  %v4741_v9 = vld [vmem:[%s5009_s6 + $0x2e8] sm:$0xff]  }
 0x902   : > { %4370 = vmatprep.subr.bf16.mxu0 %v4716_v3  ;;  %4392 = vmatprep.subr.bf16.mxu1 %v4717_v15  ;;  %v4742_v10 = vld [vmem:[%s5009_s6 + $0x228] sm:$0xff]   ;;  %v4744_v15 = vld [vmem:[%s5009_s6 + $0x260] sm:$0xff]  }
 0x903   : > { %v4743_v3 = vld [vmem:[%s5009_s6 + $0x2a8] sm:$0xff]  }
 0x905   : > { %4371 = vmatpush3.bf16.msra.mxu0 %v4718_v16  ;;  %4393 = vmatpush3.bf16.msra.mxu1 %v4719_v18  ;;  %v4745_v16 = vld [vmem:[%s5009_s6 + $0x2e0] sm:$0xff]  }
 0x906   : > { %4372 = vmatprep.subr.bf16.mxu0 %v4720_v19  ;;  %4394 = vmatprep.subr.bf16.mxu1 %v4721_v20  ;;  %v4746_v18 = vld [vmem:[%s5009_s6 + $0x220] sm:$0xff]   ;;  %v4748_v20 = vld [vmem:[%s5009_s6 + $0x258] sm:$0xff]  }
 0x907   : > { %v4747_v19 = vld [vmem:[%s5009_s6 + $0x2a0] sm:$0xff]  }
 0x909   : > { %4373 = vmatpush3.bf16.msra.mxu0 %v4722_v21  ;;  %4395 = vmatpush3.bf16.msra.mxu1 %v4723_v22  ;;  %v4749_v21 = vld [vmem:[%s5009_s6 + $0x2d8] sm:$0xff]  }
 0x90a   : > { %4374 = vmatprep.subr.bf16.mxu0 %v4724_v23  ;;  %4396 = vmatprep.subr.bf16.mxu1 %v4725_v46  ;;  %v4750_v22 = vld [vmem:[%s5009_s6 + $0x218] sm:$0xff]   ;;  %v4752_v46 = vld [vmem:[%s5009_s6 + $0x250] sm:$0xff]  }
 0x90b   : > { %v4751_v23 = vld [vmem:[%s5009_s6 + $0x298] sm:$0xff]  }
 0x90d   : > { %4375 = vmatpush3.bf16.msra.mxu0 %v4726_v25  ;;  %4397 = vmatpush3.bf16.msra.mxu1 %v4727_v26  ;;  %v4755_v25 = vld [vmem:[%s5009_s6 + $0x290] sm:$0xff]   ;;  %v4756_v26 = vld [vmem:[%s5009_s6 + $0x248] sm:$0xff]  }
 0x90e   : > { %4376 = vmatprep.subr.bf16.mxu0 %v4728_v29  ;;  %4398 = vmatprep.subr.bf16.mxu1 %v4729_v31  ;;  %v4759_v29 = vld [vmem:[%s5009_s6 + $0x288] sm:$0xff]   ;;  %v4760_v31 = vld [vmem:[%s5009_s6 + $0x240] sm:$0xff]  }
 0x911   : > { %4377 = vmatpush3.bf16.msra.mxu0 %v4730_v59  ;;  %4399 = vmatpush3.bf16.msra.mxu1 %v4731_v60  ;;  %v4227_v59 = vcombine.high %v5437_v14, %v5440_v36  ;;  %v5448_v60 = vld [vmem:[%s4998_s16 + $0xf8] sm:$0xff] }
 0x912   : > { %2878 = vmatprep.subr.bf16.mxu0 %v4185_v41  ;;  %2921 = vmatprep.subr.bf16.mxu1 %v4187_v42  ;;  %v4228_v40 = vcombine.low %v5443_v37, %v5448_v60  ;;  %v4229_v41 = vcombine.high %v5443_v37, %v5448_v60  ;;  %v4766_v14 = vld [vmem:[%s5009_s6 + $0x338] sm:$0xff]   ;;  %v4768_v37 = vld [vmem:[%s5009_s6 + $0x370] sm:$0xff]  }
 0x913   : > { %v4767_v36 = vld [vmem:[%s5009_s6 + $0x3b8] sm:$0xff]   ;;  %v4769_v60 = vld [vmem:[%s5009_s6 + $0x3f0] sm:$0xff]  }
 0x914   : > { %2747 = vmatmul.mubr.bf16.vlgmr.msra.gmra.mxu0 %v1948_v53  ;;  %2788 = vmatmul.mubr.bf16.vlgmr.msra.gmra.mxu1 %v1950_v54 }
 0x915   : > { %2879 = vmatpush1.bf16.msra.mxu0 %v4184_v56  ;;  %2922 = vmatpush1.bf16.msra.mxu1 %v4186_v49 }
 0x916   : > { %2880 = vmatprep.subr.bf16.mxu0 %v4181_v52  ;;  %2923 = vmatprep.subr.bf16.mxu1 %v4183_v55 }
 0x917   : > { %2898 = vmatprep.mubr.bf16.mxu0 %v4875_v17  ;;  %2941 = vmatprep.mubr.bf16.mxu1 %v4875_v17 }
 0x919   : > { %2881 = vmatpush1.bf16.msra.mxu0 %v4180_v57  ;;  %2924 = vmatpush1.bf16.msra.mxu1 %v4182_v58 }
 0x91a   : > { %4406 = vmatprep.subr.bf16.mxu0 %v4732_v62  ;;  %4428 = vmatprep.subr.bf16.mxu1 %v4733_v34 }
 0x91c   : > { %4188 = vmatmul.mubr.msk.bf16.vlgmr.msra.gmra.mxu0 %vm680_vm5, %v5283_v13  ;;  %4189 = vmatmul.mubr.msk.bf16.vlgmr.msra.gmra.mxu1 %vm680_vm5, %v5283_v13 }
 0x91d   : > { %4407 = vmatpush3.bf16.msra.mxu0 %v4734_v0  ;;  %4429 = vmatpush3.bf16.msra.mxu1 %v4735_v1 }
 0x91e   : > { %4408 = vmatprep.subr.bf16.mxu0 %v4736_v4  ;;  %4430 = vmatprep.subr.bf16.mxu1 %v4737_v5 }
 0x921   : > { %4409 = vmatpush3.bf16.msra.mxu0 %v4738_v6  ;;  %4431 = vmatpush3.bf16.msra.mxu1 %v4739_v7 }
 0x922   : > { %4410 = vmatprep.subr.bf16.mxu0 %v4740_v8  ;;  %4432 = vmatprep.subr.bf16.mxu1 %v4741_v9 }
 0x925   : > { %4411 = vmatpush3.bf16.msra.mxu0 %v4742_v10  ;;  %4433 = vmatpush3.bf16.msra.mxu1 %v4743_v3 }
 0x926   : > { %4412 = vmatprep.subr.bf16.mxu0 %v4744_v15  ;;  %4434 = vmatprep.subr.bf16.mxu1 %v4745_v16  ;;  %v2804_v16 = vld [vmem:[%s5003_s17 + $0x8] sm:$0xf] }
 0x929   : > { %4413 = vmatpush3.bf16.msra.mxu0 %v4746_v18  ;;  %4435 = vmatpush3.bf16.msra.mxu1 %v4747_v19 }
 0x92a   : > { %4414 = vmatprep.subr.bf16.mxu0 %v4748_v20  ;;  %4436 = vmatprep.subr.bf16.mxu1 %v4749_v21  ;;  %v2813_v21 = vrot.slane %v2804_v16, %v5264_v61 }
 0x92d   : > { %4415 = vmatpush3.bf16.msra.mxu0 %v4750_v22  ;;  %4437 = vmatpush3.bf16.msra.mxu1 %v4751_v23  ;;  %v2821_v22 = vrot.slane %v2804_v16, %v5338_v39  ;;  %v2809_v23 = vrot.slane %v2804_v16, %v5238_v2 }
 0x92e   : > { %4416 = vmatprep.subr.bf16.mxu0 %v4752_v46  ;;  %4438 = vmatprep.subr.bf16.mxu1 %v4753_v24  ;;  %v2817_v46 = vrot.slane %v2804_v16, %v5267_v63  ;;  %v4777_v16 = vld [vmem:[%s5009_s6 + $0x3e0] sm:$0xff]  }
 0x931   : > { %4417 = vmatpush3.bf16.msra.mxu0 %v4754_v43  ;;  %4439 = vmatpush3.bf16.msra.mxu1 %v4755_v25 }
 0x932   : > { %4418 = vmatprep.subr.bf16.mxu0 %v4756_v26  ;;  %4440 = vmatprep.subr.bf16.mxu1 %v4757_v27 }
 0x935   : > { %4419 = vmatpush3.bf16.msra.mxu0 %v4758_v28  ;;  %4441 = vmatpush3.bf16.msra.mxu1 %v4759_v29 }
 0x936   : > { %4420 = vmatprep.subr.bf16.mxu0 %v4760_v31  ;;  %4442 = vmatprep.subr.bf16.mxu1 %v4761_v32 }
 0x939   : > { %4421 = vmatpush3.bf16.msra.mxu0 %v4762_v33  ;;  %4443 = vmatpush3.bf16.msra.mxu1 %v4763_v35 }
 0x93a   : > { %3386 = vmatprep.subr.bf16.mxu0 %v4227_v59  ;;  %3429 = vmatprep.subr.bf16.mxu1 %v4229_v41 }
 0x9b4   : > { %v4334_v42 = vpop.f32.mrf.mxu0  ;;  %v4356_v44 = vpop.f32.mrf.mxu1 }
 0x9b6   : > { %v4335_v45 = vpop.f32.mrf.mxu0  ;;  %v4357_v47 = vpop.f32.mrf.mxu1 }
 0x9b7   : > { %v4336_v48 = vadd.f32 %v4335_v45, %v4334_v42  ;;  %v4358_v50 = vadd.f32 %v4357_v47, %v4356_v44 }
 0x9b8   : > { %v4337_v51 = vpop.f32.mrf.mxu0  ;;  %v4359_v56 = vpop.f32.mrf.mxu1 }
 0x9b9   : > { %v2516_v49 = vadd.f32 %v4358_v50, %v4336_v48  ;;  %v3304_v48 = vld [vmem:[%s4998_s16 + $0x30] sm:$0xff] }
 0x9ba   : > { %v4338_v52 = vpop.f32.mrf.mxu0  ;;  %v4360_v53 = vpop.f32.mrf.mxu1  ;;  %v3306_v50 = vld [vmem:[%s4998_s16 + $0x70] sm:$0xff] }
 0x9bb   : > { %v4339_v54 = vadd.f32 %v4338_v52, %v4337_v51  ;;  %v4361_v55 = vadd.f32 %v4360_v53, %v4359_v56  ;;  %v3305_v53 = vld [vmem:[%s4998_s16 + $0x38] sm:$0xff] }
 0x9bd   : > { %v2519_v57 = vadd.f32 %v4361_v55, %v4339_v54  ;;  %v3307_v54 = vld [vmem:[%s4998_s16 + $0x78] sm:$0xff] }
 0x9d4   : > { %v4378_v58 = vpop.f32.mrf.mxu0  ;;  %v4400_v62 = vpop.f32.mrf.mxu1 }
 0x9d6   : > { %v4379_v34 = vpop.f32.mrf.mxu0  ;;  %v4401_v0 = vpop.f32.mrf.mxu1 }
 0x9d7   : > { %v4380_v1 = vadd.f32 %v4379_v34, %v4378_v58  ;;  %v4402_v4 = vadd.f32 %v4401_v0, %v4400_v62 }
 0x9d8   : > { %v4381_v5 = vpop.f32.mrf.mxu0  ;;  %v4403_v6 = vpop.f32.mrf.mxu1 }
 0x9d9   : > { %v2749_v7 = vadd.f32 %v4380_v1, %v2516_v49  ;;  %v4223_v1 = vcombine.high %v3304_v48, %v3306_v50 }
 0x9da   : > { %v4382_v8 = vpop.f32.mrf.mxu0  ;;  %v4404_v9 = vpop.f32.mrf.mxu1 }
 0x9db   : > { %v5456_v10 = vadd.f32 %v4402_v4, %v2749_v7  ;;  %v4383_v3 = vadd.f32 %v4382_v8, %v4381_v5  ;;  %v4405_v15 = vadd.f32 %v4404_v9, %v4403_v6  ;;  %v4225_v4 = vcombine.high %v3305_v53, %v3307_v54  ;;  %v4764_v7 = vld [vmem:[%s5009_s6 + $0x378] sm:$0xff]   ;;  %v4773_v9 = vld [vmem:[%s5009_s6 + $0x3e8] sm:$0xff]  }
 0x9dc   : > { %v2900_v18 = vpop.f32.mrf.mxu0  ;;  %v2943_v19 = vpop.f32.mrf.mxu1  ;;  %v4222_v5 = vcombine.low %v3304_v48, %v3306_v50  ;;  %v4224_v6 = vcombine.low %v3305_v53, %v3307_v54  ;;  %v4765_v8 = vld [vmem:[%s5009_s6 + $0x3f8] sm:$0xff]  }
 0x9dd   : > { %v2752_v20 = vadd.f32 %v4383_v3, %v2519_v57  ;;  %v2901_v33 = vadd.f32 %v2900_v18, %v2809_v23  ;;  %v2944_v35 = vadd.f32 %v2943_v19, %v2817_v46  ;;  %v4774_v3 = vld [vmem:[%s5009_s6 + $0x328] sm:$0xff]   ;;  %v4778_v18 = vld [vmem:[%s5009_s6 + $0x320] sm:$0xff]  }
 0x9de   : > { %v2902_v24 = vpop.f32.mrf.mxu0  ;;  %v2945_v43 = vpop.f32.mrf.mxu1  ;;  %v4779_v19 = vld [vmem:[%s5009_s6 + $0x3a0] sm:$0xff]  }
 0x9df   : > { %v5463_v25 = vadd.f32 %v4405_v15, %v2752_v20  ;;  %v2903_v28 = vadd.f32 %v2902_v24, %v2813_v21  ;;  %v2946_v29 = vadd.f32 %v2945_v43, %v2821_v22  ;;  %v2952_v55 = vmax.f32 %v2901_v33, 0.0  ;;  %v4775_v15 = vld [vmem:[%s5009_s6 + $0x3a8] sm:$0xff]   ;;  %v4780_v20 = vld [vmem:[%s5009_s6 + $0x358] sm:$0xff]   ;;  %v4785_v24 = vld [vmem:[%s5009_s6 + $0x3d0] sm:$0xff]  }
 0x9e0   : > { %v2904_v26 = vpop.f32.mrf.mxu0  ;;  %v2947_v27 = vpop.f32.mrf.mxu1  ;;  %v2954_v57 = vmax.f32 %v2944_v35, 0.0  ;;  %v4786_v43 = vld [vmem:[%s5009_s6 + $0x310] sm:$0xff]   ;;  %v4793_v33 = vld [vmem:[%s5009_s6 + $0x3c0] sm:$0xff]  }
 0x9e1   : > { %v2905_v31 = vadd.f32 %v2904_v26, %v2809_v23  ;;  %v2948_v32 = vadd.f32 %v2947_v27, %v2817_v46  ;;  %v2953_v51 = vmax.f32 %v2903_v28, 0.0  ;;  %v2955_v56 = vmax.f32 %v2946_v29, 0.0  ;;  %v4783_v23 = vld [vmem:[%s5009_s6 + $0x398] sm:$0xff]   ;;  %v4784_v46 = vld [vmem:[%s5009_s6 + $0x350] sm:$0xff]   ;;  %v4788_v27 = vld [vmem:[%s5009_s6 + $0x348] sm:$0xff]  }
 0x9e2   : > { %v2906_v59 = vpop.f32.mrf.mxu0  ;;  %v2949_v41 = vpop.f32.mrf.mxu1  ;;  %v4787_v26 = vld [vmem:[%s5009_s6 + $0x390] sm:$0xff]   ;;  %v4789_v28 = vld [vmem:[%s5009_s6 + $0x3c8] sm:$0xff]   ;;  %v4794_v35 = vld [vmem:[%s5009_s6 + $0x300] sm:$0xff]  }
 0x9e3   : > { %v2907_v42 = vadd.f32 %v2906_v59, %v2813_v21  ;;  %v2950_v44 = vadd.f32 %v2949_v41, %v2821_v22  ;;  %v2956_v45 = vmax.f32 %v2905_v31, 0.0  ;;  %v2958_v47 = vmax.f32 %v2948_v32, 0.0  ;;  %v4781_v21 = vld [vmem:[%s5009_s6 + $0x3d8] sm:$0xff]   ;;  %v4790_v29 = vld [vmem:[%s5009_s6 + $0x308] sm:$0xff]   ;;  %v4792_v32 = vld [vmem:[%s5009_s6 + $0x340] sm:$0xff]  }
 0x9e4   : > { %v4782_v22 = vld [vmem:[%s5009_s6 + $0x318] sm:$0xff]   ;;  %v4791_v31 = vld [vmem:[%s5009_s6 + $0x388] sm:$0xff]   ;;  %v4795_v59 = vld [vmem:[%s5009_s6 + $0x380] sm:$0xff]  }
 0x9e5   : > { %v2957_v49 = vmax.f32 %v2907_v42, 0.0  ;;  %v2959_v52 = vmax.f32 %v2950_v44, 0.0  ;;  %v2960_v34 = vpack.c.bf16 %v2956_v45, %v2952_v55  ;;  %v2962_v0 = vpack.c.bf16 %v2958_v47, %v2954_v57  ;;  %v3312_v57 = vld [vmem:[%s5003_s17 + $0xc] sm:$0xf]  ;;  %s3886_s17 = sld [smem:[#allocation3]] (!%p4264_p6) }
 0x9e7   : > { %v2961_v58 = vpack.c.bf16 %v2957_v49, %v2953_v51  ;;  %v2963_v62 = vpack.c.bf16 %v2959_v52, %v2955_v56 }
 0x9e9   : > { %3252 = vmatprep.mubr.bf16.mxu0 %v2961_v58  ;;  %3293 = vmatprep.mubr.bf16.mxu1 %v2963_v62 }
 0x9ea   : > { %3253 = vmatmul.mubr.bf16.vlgmr.msra.gmra.mxu0 %v2960_v34  ;;  %3294 = vmatmul.mubr.bf16.vlgmr.msra.gmra.mxu1 %v2962_v0  ;;  %v3321_v0 = vrot.slane %v3312_v57, %v5264_v61 }
 0x9eb   : > { %3387 = vmatpush1.bf16.msra.mxu0 %v4226_v38  ;;  %3430 = vmatpush1.bf16.msra.mxu1 %v4228_v40  ;;  %v4771_v38 = vld [vmem:[%s5009_s6 + $0x3b0] sm:$0xff]   ;;  %v4772_v40 = vld [vmem:[%s5009_s6 + $0x368] sm:$0xff]  }
 0x9ec   : > { %3388 = vmatprep.subr.bf16.mxu0 %v4223_v1  ;;  %3431 = vmatprep.subr.bf16.mxu1 %v4225_v4  ;;  %v3329_v1 = vrot.slane %v3312_v57, %v5338_v39  ;;  %v3317_v4 = vrot.slane %v3312_v57, %v5238_v2 }
 0x9ed   : > { %3406 = vmatprep.mubr.bf16.mxu0 %v4875_v17  ;;  %3449 = vmatprep.mubr.bf16.mxu1 %v4875_v17  ;;  %v4770_v17 = vld [vmem:[%s5009_s6 + $0x330] sm:$0xff]  }
 0x9ef   : > { %3389 = vmatpush1.bf16.msra.mxu0 %v4222_v5  ;;  %3432 = vmatpush1.bf16.msra.mxu1 %v4224_v6  ;;  %v3325_v5 = vrot.slane %v3312_v57, %v5267_v63 }
 0x9f0   : > { %4450 = vmatprep.subr.bf16.mxu0 %v4764_v7  ;;  %4472 = vmatprep.subr.bf16.mxu1 %v4765_v8 }
 0x9f2   : > { %4230 = vmatmul.mubr.msk.bf16.vlgmr.msra.gmra.mxu0 %vm680_vm5, %v5283_v13  ;;  %4231 = vmatmul.mubr.msk.bf16.vlgmr.msra.gmra.mxu1 %vm680_vm5, %v5283_v13  ;;  %v4776_v13 = vld [vmem:[%s5009_s6 + $0x360] sm:$0xff]  }
 0x9f3   : > { %4451 = vmatpush3.bf16.msra.mxu0 %v4766_v14  ;;  %4473 = vmatpush3.bf16.msra.mxu1 %v4767_v36 }
 0x9f4   : > { %4452 = vmatprep.subr.bf16.mxu0 %v4768_v37  ;;  %4474 = vmatprep.subr.bf16.mxu1 %v4769_v60 }
 0x9f7   : > { %4453 = vmatpush3.bf16.msra.mxu0 %v4770_v17  ;;  %4475 = vmatpush3.bf16.msra.mxu1 %v4771_v38 }
 0x9f8   : > { %4454 = vmatprep.subr.bf16.mxu0 %v4772_v40  ;;  %4476 = vmatprep.subr.bf16.mxu1 %v4773_v9 }
 0x9fb   : > { %4455 = vmatpush3.bf16.msra.mxu0 %v4774_v3  ;;  %4477 = vmatpush3.bf16.msra.mxu1 %v4775_v15 }
 0x9fc   : > { %4456 = vmatprep.subr.bf16.mxu0 %v4776_v13  ;;  %4478 = vmatprep.subr.bf16.mxu1 %v4777_v16 }
 0x9ff   : > { %4457 = vmatpush3.bf16.msra.mxu0 %v4778_v18  ;;  %4479 = vmatpush3.bf16.msra.mxu1 %v4779_v19 }
 0xa00   : > { %4458 = vmatprep.subr.bf16.mxu0 %v4780_v20  ;;  %4480 = vmatprep.subr.bf16.mxu1 %v4781_v21 }
 0xa03   : > { %4459 = vmatpush3.bf16.msra.mxu0 %v4782_v22  ;;  %4481 = vmatpush3.bf16.msra.mxu1 %v4783_v23 }
 0xa04   : > { %4460 = vmatprep.subr.bf16.mxu0 %v4784_v46  ;;  %4482 = vmatprep.subr.bf16.mxu1 %v4785_v24 }
 0xa07   : > { %4461 = vmatpush3.bf16.msra.mxu0 %v4786_v43  ;;  %4483 = vmatpush3.bf16.msra.mxu1 %v4787_v26 }
 0xa08   : > { %4462 = vmatprep.subr.bf16.mxu0 %v4788_v27  ;;  %4484 = vmatprep.subr.bf16.mxu1 %v4789_v28 }
 0xa0b   : > { %4463 = vmatpush3.bf16.msra.mxu0 %v4790_v29  ;;  %4485 = vmatpush3.bf16.msra.mxu1 %v4791_v31 }
 0xa0c   : > { %4464 = vmatprep.subr.bf16.mxu0 %v4792_v32  ;;  %4486 = vmatprep.subr.bf16.mxu1 %v4793_v33 }
 0xa0f   : > { %4465 = vmatpush3.bf16.msra.mxu0 %v4794_v35  ;;  %4487 = vmatpush3.bf16.msra.mxu1 %v4795_v59  ;;  %v4838_v59 = vld [vmem:[%s4993_s28] sm:$0x3f] }
 0xaaa   : > { %v4422_v41 = vpop.f32.mrf.mxu0  ;;  %v4444_v42 = vpop.f32.mrf.mxu1 }
 0xaac   : > { %v4423_v44 = vpop.f32.mrf.mxu0  ;;  %v4445_v45 = vpop.f32.mrf.mxu1 }
 0xaad   : > { %v4424_v47 = vadd.f32 %v4423_v44, %v4422_v41  ;;  %v4446_v48 = vadd.f32 %v4445_v45, %v4444_v42  ;;  %v3815_v41 = vrot.slane %v4838_v59, %v5338_v39 }
 0xaae   : > { %v4425_v50 = vpop.f32.mrf.mxu0  ;;  %v4447_v51 = vpop.f32.mrf.mxu1 }
 0xaaf   : > { %v3296_v56 = vadd.f32 %v4446_v48, %v4424_v47 }
 0xab0   : > { %v4426_v49 = vpop.f32.mrf.mxu0  ;;  %v4448_v52 = vpop.f32.mrf.mxu1 }
 0xab1   : > { %v3302_v53 = vadd.f32 %v3296_v56, %v5456_v10  ;;  %v4427_v54 = vadd.f32 %v4426_v49, %v4425_v50  ;;  %v4449_v55 = vadd.f32 %v4448_v52, %v4447_v51 }
 0xab2   : > { %v3408_v58 = vpop.f32.mrf.mxu0  ;;  %v3451_v62 = vpop.f32.mrf.mxu1 }
 0xab3   : > { %v3299_v34 = vadd.f32 %v4449_v55, %v4427_v54  ;;  %v3409_v38 = vadd.f32 %v3408_v58, %v3317_v4  ;;  %v3452_v40 = vadd.f32 %v3451_v62, %v3325_v5 }
 0xab4   : > { %v3410_v6 = vpop.f32.mrf.mxu0  ;;  %v3453_v7 = vpop.f32.mrf.mxu1 }
 0xab5   : > { %v3303_v8 = vadd.f32 %v3299_v34, %v5463_v25  ;;  %v3411_v36 = vadd.f32 %v3410_v6, %v3321_v0  ;;  %v3454_v37 = vadd.f32 %v3453_v7, %v3329_v1  ;;  %v3460_v21 = vmax.f32 %v3409_v38, 0.0 }
 0xab6   : > { %v3412_v14 = vpop.f32.mrf.mxu0  ;;  %v3455_v10 = vpop.f32.mrf.mxu1  ;;  %v3462_v25 = vmax.f32 %v3452_v40, 0.0 }
 0xab7   : > { %v3413_v60 = vadd.f32 %v3412_v14, %v3317_v4  ;;  %v3456_v17 = vadd.f32 %v3455_v10, %v3325_v5  ;;  %v3461_v18 = vmax.f32 %v3411_v36, 0.0  ;;  %v3463_v63 = vmax.f32 %v3454_v37, 0.0 }
 0xab8   : > { %v3414_v9 = vpop.f32.mrf.mxu0  ;;  %v3457_v61 = vpop.f32.mrf.mxu1  ;;  %v3848_v36 = vsub.s32 4, %v5235_v30  ;;  %v3854_v37 = vsub.s32 5, %v5235_v30 }
 0xab9   : > { %v3415_v3 = vadd.f32 %v3414_v9, %v3321_v0  ;;  %v3458_v15 = vadd.f32 %v3457_v61, %v3329_v1  ;;  %v3464_v13 = vmax.f32 %v3413_v60, 0.0  ;;  %v3466_v16 = vmax.f32 %v3456_v17, 0.0 }
 0xaba   : > { %v3849_v60 = vrot.slane %v4838_v59, %v3848_v36  ;;  %v3855_v38 = vrot.slane %v4838_v59, %v3854_v37 }
 0xabb   : > { %v3465_v19 = vmax.f32 %v3415_v3, 0.0  ;;  %v3467_v20 = vmax.f32 %v3458_v15, 0.0  ;;  %v3468_v46 = vpack.c.bf16 %v3464_v13, %v3460_v21  ;;  %v3470_v24 = vpack.c.bf16 %v3466_v16, %v3462_v25 }
 0xabd   : > { %v3469_v22 = vpack.c.bf16 %v3465_v19, %v3461_v18  ;;  %v3471_v23 = vpack.c.bf16 %v3467_v20, %v3463_v63 }
 0xabf   : > { %3760 = vmatprep.mubr.bf16.mxu0 %v3469_v22  ;;  %3801 = vmatprep.mubr.bf16.mxu1 %v3471_v23 }
 0xac0   : > { %3761 = vmatmul.mubr.bf16.vlgmr.msra.gmra.mxu0 %v3468_v46  ;;  %3802 = vmatmul.mubr.bf16.vlgmr.msra.gmra.mxu1 %v3470_v24 }
 0xb80   : > { %v4466_v43 = vpop.f32.mrf.mxu0  ;;  %v4488_v26 = vpop.f32.mrf.mxu1 }
 0xb82   : > { %v4467_v27 = vpop.f32.mrf.mxu0  ;;  %v4489_v28 = vpop.f32.mrf.mxu1 }
 0xb83   : > { %v4468_v29 = vadd.f32 %v4467_v27, %v4466_v43  ;;  %v4490_v31 = vadd.f32 %v4489_v28, %v4488_v26 }
 0xb84   : > { %v4469_v32 = vpop.f32.mrf.mxu0  ;;  %v4491_v33 = vpop.f32.mrf.mxu1 }
 0xb85   : > { %v3804_v35 = vadd.f32 %v4490_v31, %v4468_v29 }
 0xb86   : > { %v4470_v42 = vpop.f32.mrf.mxu0  ;;  %v4492_v44 = vpop.f32.mrf.mxu1 }
 0xb87   : > { %v3810_v45 = vadd.f32 %v3804_v35, %v3302_v53  ;;  %v4471_v47 = vadd.f32 %v4470_v42, %v4469_v32  ;;  %v4493_v48 = vadd.f32 %v4492_v44, %v4491_v33 }
 0xb89   : > { %v3807_v50 = vadd.f32 %v4493_v48, %v4471_v47  ;;  %v3816_v51 = vadd.f32 %v3815_v41, %v3810_v45 }
 0xb8b   : > { %v3811_v56 = vadd.f32 %v3807_v50, %v3303_v8  ;;  %v3818_v49 = vadd.f32 %v3816_v51, %v5277_v11 }
 0xb8d   : > { %v3820_v52 = vsel %vm680_vm5, %v3818_v49, 0.0  ;;  %v3817_v54 = vadd.f32 %v3815_v41, %v3811_v56 }
 0xb8e   : > { %3821 = vadd.xlane.f32.xlu0 %v3820_v52 }
 0xb8f   : > { %v3819_v55 = vadd.f32 %v3817_v54, %v5279_v12 }
 0xb91   : > { %v3823_v57 = vsel %vm680_vm5, %v3819_v55, 0.0 }
 0xb92   : > { %3824 = vadd.xlane.f32.xlu1 %v3823_v57 }
 0xc17   : > { %v3822_v39 = vpop.xlane.xlu0 %3821 }
 0xc18   : > { %v3826_v58 = vmul.f32 0.03125, %v3822_v39 }
 0xc1a   : > { %v3828_v62 = vsub.f32 %v3818_v49, %v3826_v58 }
 0xc1b   : > { %v3825_v53 = vpop.xlane.xlu1 %3824 }
 0xc1c   : > { %v3827_v34 = vmul.f32 0.03125, %v3825_v53  ;;  %v3830_v0 = vmul.f32 %v3828_v62, %v3828_v62 }
 0xc1e   : > { %v3829_v1 = vsub.f32 %v3819_v55, %v3827_v34  ;;  %v3832_v4 = vsel %vm680_vm5, %v3830_v0, 0.0 }
 0xc1f   : > { %3833 = vadd.xlane.f32.xlu0 %v3832_v4 }
 0xc20   : > { %v3831_v11 = vmul.f32 %v3829_v1, %v3829_v1 }
 0xc22   : > { %v3835_v5 = vsel %vm680_vm5, %v3831_v11, 0.0 }
 0xc23   : > { %3836 = vadd.xlane.f32.xlu1 %v3835_v5 }
 0xca8   : > { %v3834_v6 = vpop.xlane.xlu0 %3833 }
 0xca9   : > { %v3838_v7 = vmul.f32 0.03125, %v3834_v6 }
 0xcab   : > { %v3840_v12 = vadd.f32 1e-05, %v3838_v7 }
 0xcac   : > { %v3837_v8 = vpop.xlane.xlu1 %3836 }
 0xcad   : > { %4832 = vrsqrt.f32 %v3840_v12  ;;  %v3839_v14 = vmul.f32 0.03125, %v3837_v8 }
 0xcaf   : > { %v3841_v10 = vadd.f32 1e-05, %v3839_v14 }
 0xcb1   : > { %4834 = vrsqrt.f32 %v3841_v10 }
 0xcba   : > { %v4833_v17 = vpop.eup %4832 }
 0xcbb   : > { %v3844_v40 = vmul.f32 %v4833_v17, %v3828_v62 }
 0xcbd   : > { %v3850_v9 = vmul.f32 %v3849_v60, %v3844_v40 }
 0xcbe   : > { %v4835_v61 = vpop.eup %4834 }
 0xcbf   : > { %v3856_v3 = vadd.f32 %v3855_v38, %v3850_v9  ;;  %v3845_v15 = vmul.f32 %v4835_v61, %v3829_v1 }
 0xcc1   : > { %3858 = vst.msk [vmem:[#allocation2] sm:$0xff] %vm680_vm5, %v3856_v3  ;;  %v3851_v13 = vmul.f32 %v3849_v60, %v3845_v15  ;;  %3863 = sbr.rel (%p4264_p6) target bundleno = 3421 (0xd5d), region = 80 }
 0xcc3   : > { %v3857_v16 = vadd.f32 %v3855_v38, %v3851_v13 }
 0xcc5   : > { %3859 = vst.msk [vmem:[#allocation2 + $0x8] sm:$0xff] %vm680_vm5, %v3857_v16 }
 0xcc6   : > { %v4265_v18 = vld [vmem:[%s5564_s11] ss:$0 sm:$0xff]  ;;  %vm3878_vm10 = vcmask 261127   ;;  %vm3882_vm11 = vcmask 253952   ;;  %v3887_v22 = vstv %s3886_s17  ;;  %v3894_v23 = vsub.s32 7, %v5235_v30 }
 0xcc7   : > { %v3871_v63 = vmul.f32 %v4265_v18, %v3856_v3  ;;  %v3872_v19 = vmul.f32 %v4265_v18, %v3857_v16  ;;  %vm3902_vm12 = vcmask 0  }
 0xcc9   : > { %v3879_v20 = vsel %vm3878_vm10, %v3871_v63, 0.0  ;;  %v3875_v21 = vrot.slane %v3872_v19, 7 }
 0xcca   : > { %3880 = vadd.xlane.f32.xlu0 %v3879_v20 }
 0xccb   : > { %v3883_v25 = vsel %vm3882_vm11, %v3875_v21, 0.0 }
 0xcce   : > { %3884 = vadd.xlane.f32.xlu0 %v3883_v25 }
 0xd53   : > { %v3881_v46 = vpop.xlane.xlu0 %3880 }
 0xd54   : > { %v3888_v24 = vadd.f32 %v3887_v22, %v3881_v46 }
 0xd56   : > { %v3895_v43 = vrot.slane %v3888_v24, %v3894_v23 }
 0xd57   : > { %v3885_v26 = vpop.xlane.xlu0 %3884 }
 0xd58   : > { %3903 = vst.msk [vmem:[%s5566_s13] sm:$0x1] %vm3902_vm12, %v3895_v43  ;;  %v3889_v27 = vadd.f32 %v3887_v22, %v3885_v26 }
 0xd5a   : > { %v3899_v28 = vrot.slane %v3889_v27, %v5238_v2 }
 0xd5c   : > { %3904 = vst.msk [vmem:[%s5566_s13 + $0x1] sm:$0x1] %vm3902_vm12, %v3899_v28 }
 0xd5d PF: > { %s5577_s18 = sld [smem:[#allocation5_spill]] }
 0xd5e   : > { %s5578_s27 = sld [smem:[#allocation4_spill]] }
 0xd5f   : > { %s5579_s28 = sld [smem:[#allocation6_spill]] }
 0xd63   : > { %s24_s29 = sadd.s32 1, %s5577_s18  }
 0xd64   : > { %p21_p7 = scmp.ge.s32.totalorder %s24_s29, 4  }
 0xd66   :  { %23 = sbr.rel (!%p21_p7) target bundleno = 4 (0x4), region = 131 }

</bundles_post_ra>
